<compile_context>
chip_gen: v5e
topology: v5e:2x2
jax: 0.10.0
libtpu: 0.0.40
codegen_flags: <defaults>
</compile_context>

<pallas_src>
import functools

import jax
import jax.numpy as jnp
from jax import lax
from jax.experimental import pallas as pl
from jax.experimental.pallas import tpu as pltpu

_K = 5                  # Conv1d kernel_size
_PAD = (_K - 1) // 2    # padding = 2

_COMPILER_PARAMS = pltpu.CompilerParams(
    dimension_semantics=("parallel",),        # batch-tile axis -> both TCs on v7x
    vmem_limit_bytes=48 * 1024 * 1024,        # fits v7x's 64 MiB, ample for v5e/v6e
)


# -----------------------------------------------------------------------------
# Fused kernel: conv1 -> conv2 -> tanh-RNN -> last-step conv3 -> fc
# One batch tile (B_TILE rows) per grid step; everything stays in VMEM.
# -----------------------------------------------------------------------------
def _fused_rnn_forward_kernel(
        x_ref, h0_ref,
        w1_ref, b1_ref, w2_ref, b2_ref,
        wih_ref, whh_ref, brnn_ref,
        w3_ref, b3_ref, wfc_ref, bfc_ref,
        o_ref,
        xp_ref, hp_ref, xproj_ref):
    # x_ref   : (T, Bt, Cin) f32  (time-major block of the input)
    # h0_ref  : (Bt, H) f32
    # w1_ref  : (K, Cin, C1) bf16   b1_ref: (1, C1) f32
    # w2_ref  : (K, C1,  C1) bf16   b2_ref: (1, C1) f32
    # wih_ref : (C1, H) bf16        whh_ref: (H, H) bf16   brnn_ref: (1, H) f32
    # w3_ref  : (3, H, H) bf16 (conv3 taps 0..2; taps 3,4 hit zero padding at t=T-1)
    # b3_ref  : (1, H) f32
    # wfc_ref : (H, O) bf16         bfc_ref: (1, O) f32
    # o_ref   : (Bt, O) f32
    # xp_ref  : ((T+K-1)*Bt, Cin) bf16 scratch  (time-major rows, zero halo = conv padding)
    # hp_ref  : ((T+K-1)*Bt, C1 ) bf16 scratch
    # xproj_ref: (T, Bt, H) f32 scratch (hoisted RNN input projection, time-major)
    T, Bt, Cin = x_ref.shape
    C1 = w1_ref.shape[-1]
    H = whh_ref.shape[0]
    f32, bf16 = jnp.float32, jnp.bfloat16

    # ---- conv1 + ReLU ------------------------------------------------------
    # Zero only the halo rows (interior is fully overwritten right after).
    xp_ref[0:_PAD * Bt, :] = jnp.zeros((_PAD * Bt, Cin), bf16)
    xp_ref[(_PAD + T) * Bt:(T + _K - 1) * Bt, :] = jnp.zeros((_PAD * Bt, Cin), bf16)
    # Stage the f32 input as bf16 (cast folded into the store; no wrapper cast).
    xp_ref[_PAD * Bt:(_PAD + T) * Bt, :] = (
        x_ref[...].reshape(T * Bt, Cin).astype(bf16))

    acc1 = jnp.zeros((T * Bt, C1), f32)
    for k in range(_K):                       # K static tap-accumulated MXU matmuls
        acc1 += jnp.dot(xp_ref[k * Bt:(k + T) * Bt, :], w1_ref[k],
                        preferred_element_type=f32)
    h1 = jnp.maximum(acc1 + b1_ref[...], 0.0)                       # (T*Bt, C1) f32
    # TODO(synk): dropout is identity (eval semantics); training-mode dropout would
    # need pltpu.prng_* masking here.

    # ---- conv2 + ReLU (reads conv1's output straight from VMEM) -------------
    hp_ref[0:_PAD * Bt, :] = jnp.zeros((_PAD * Bt, C1), bf16)
    hp_ref[(_PAD + T) * Bt:(T + _K - 1) * Bt, :] = jnp.zeros((_PAD * Bt, C1), bf16)
    hp_ref[_PAD * Bt:(_PAD + T) * Bt, :] = h1.astype(bf16)

    acc2 = jnp.zeros((T * Bt, C1), f32)
    for k in range(_K):
        acc2 += jnp.dot(hp_ref[k * Bt:(k + T) * Bt, :], w2_ref[k],
                        preferred_element_type=f32)
    h2 = jnp.maximum(acc2 + b2_ref[...], 0.0)                       # (T*Bt, C1) f32

    # ---- RNN: input projection hoisted out of the recurrence ----------------
    # One (T*Bt, C1) @ (C1, H) matmul for every timestep; stored time-major so
    # each serial step reads a contiguous (Bt, H) slab.
    xproj = jnp.dot(h2.astype(bf16), wih_ref[...],
                    preferred_element_type=f32) + brnn_ref[...]
    xproj_ref[...] = xproj.reshape(T, Bt, H)

    h0 = h0_ref[...]                          # (Bt, H) f32
    zero_h = jnp.zeros_like(h0)

    def step(t, carry):
        h_m2, h_m1, h = carry
        pre = xproj_ref[t] + jnp.dot(h.astype(bf16), whh_ref[...],
                                     preferred_element_type=f32)
        return (h_m1, h, jnp.tanh(pre))       # tanh / carry stay f32

    # Carry = (h[t-2], h[t-1], h[t]); after T steps these are the ONLY hidden
    # states conv3's final output position (t = T-1) reads (requires T >= 3).
    carry = lax.fori_loop(0, T, step, (zero_h, zero_h, h0),
                          unroll=(True if T <= 32 else 8))
    h_m2, h_m1, h_last = carry

    # ---- conv3 at the last timestep only (+ReLU): per-tap accumulation ------
    c3 = (jnp.dot(h_m2.astype(bf16), w3_ref[0], preferred_element_type=f32)
          + jnp.dot(h_m1.astype(bf16), w3_ref[1], preferred_element_type=f32)
          + jnp.dot(h_last.astype(bf16), w3_ref[2], preferred_element_type=f32)
          + b3_ref[...])
    c3 = jnp.maximum(c3, 0.0)                                       # (Bt, H) f32

    # ---- fc ------------------------------------------------------------------
    out = jnp.dot(c3.astype(bf16), wfc_ref[...],
                  preferred_element_type=f32) + bfc_ref[...]
    o_ref[...] = out.astype(o_ref.dtype)


# -----------------------------------------------------------------------------
# Wrapper
# -----------------------------------------------------------------------------
def _round_up(n, m):
    return ((n + m - 1) // m) * m


def _pick_batch_tile(B):
    """Batch rows per grid step: multiple of 8 (sublane-aligned), big enough to
    amortize per-step overhead / fill the MXU, capped for v7x's 64 MiB VMEM."""
    bt = min(64, _round_up(B, 8))
    # v7x has 2 TensorCores: prefer an even grid length when halving the tile
    # achieves it (no-op on single-core v5e/v6e).
    if bt == 64:
        n = pl.cdiv(B, bt)
        if n > 1 and n % 2 == 1 and pl.cdiv(B, 32) % 2 == 0:
            bt = 32
    return bt


def _full_spec(shape):
    return pl.BlockSpec(shape, lambda i: (0,) * len(shape))


def fused_rnn_forward(x, h0, kp, *, batch_tile=None):
    """x: (B, T, Cin) f32, h0: (B, H) f32, kp: kernel-layout params -> (B, O) f32."""
    B, T, Cin = x.shape
    assert T >= 3, "last-timestep conv3 shortcut assumes T >= 3"
    C1 = kp["conv2_w"].shape[-1]
    H = kp["w_hh"].shape[0]
    O = kp["fc_w"].shape[-1]

    Bt = batch_tile if batch_tile is not None else _pick_batch_tile(B)
    Bp = _round_up(B, Bt)
    if Bp != B:                                # pad batch to a whole tile count
        x = jnp.pad(x, ((0, Bp - B), (0, 0), (0, 0)))
        h0 = jnp.pad(h0, ((0, Bp - B), (0, 0)))
    # One-time layout plumbing: present the input time-major to the kernel.
    x_tm = jnp.swapaxes(x, 0, 1)               # (T, Bp, Cin), still f32

    out = pl.pallas_call(
        _fused_rnn_forward_kernel,
        out_shape=jax.ShapeDtypeStruct((Bp, O), jnp.float32),
        grid=(Bp // Bt,),
        in_specs=[
            pl.BlockSpec((T, Bt, Cin), lambda i: (0, i, 0)),
            pl.BlockSpec((Bt, H), lambda i: (i, 0)),
            _full_spec(kp["conv1_w"].shape), _full_spec(kp["conv1_b"].shape),
            _full_spec(kp["conv2_w"].shape), _full_spec(kp["conv2_b"].shape),
            _full_spec(kp["w_ih"].shape), _full_spec(kp["w_hh"].shape),
            _full_spec(kp["b_rnn"].shape),
            _full_spec(kp["conv3_w_last"].shape), _full_spec(kp["conv3_b"].shape),
            _full_spec(kp["fc_w"].shape), _full_spec(kp["fc_b"].shape),
        ],
        out_specs=pl.BlockSpec((Bt, O), lambda i: (i, 0)),
        scratch_shapes=[
            pltpu.VMEM(((T + _K - 1) * Bt, Cin), jnp.bfloat16),   # conv1 staging
            pltpu.VMEM(((T + _K - 1) * Bt, C1), jnp.bfloat16),    # conv2 staging
            pltpu.VMEM((T, Bt, H), jnp.float32),                  # hoisted x @ W_ih
        ],
        compiler_params=_COMPILER_PARAMS,
    )(x_tm, h0,
      kp["conv1_w"], kp["conv1_b"], kp["conv2_w"], kp["conv2_b"],
      kp["w_ih"], kp["w_hh"], kp["b_rnn"],
      kp["conv3_w_last"], kp["conv3_b"], kp["fc_w"], kp["fc_b"])
    return out[:B]


@functools.partial(jax.jit, static_argnames=("batch_tile",))
def rnn_model_forward(x, h0, kp, batch_tile=None):
    return fused_rnn_forward(x, h0, kp, batch_tile=batch_tile)


# -----------------------------------------------------------------------------
# Parameter init (torch-layout, f32) and one-time kernel-layout preparation.
# -----------------------------------------------------------------------------
def _unif(key, shape, fan_in):
    bound = 1.0 / jnp.sqrt(jnp.asarray(fan_in, jnp.float32))
    return jax.random.uniform(key, shape, jnp.float32, -bound, bound)


def init_params(key, input_size, conv_size, hidden_size, output_size, K=_K):
    ks = jax.random.split(key, 12)
    p = {}
    # conv weights stored as (K, Cin, Cout)
    p["conv1_w"] = _unif(ks[0], (K, input_size, conv_size), input_size * K)
    p["conv1_b"] = _unif(ks[1], (conv_size,), input_size * K)
    p["conv2_w"] = _unif(ks[2], (K, conv_size, conv_size), conv_size * K)
    p["conv2_b"] = _unif(ks[3], (conv_size,), conv_size * K)
    # nn.RNN weights, torch layout: w_ih (H, Cin), w_hh (H, H)
    p["w_ih"] = _unif(ks[4], (hidden_size, conv_size), hidden_size)
    p["w_hh"] = _unif(ks[5], (hidden_size, hidden_size), hidden_size)
    p["b_ih"] = _unif(ks[6], (hidden_size,), hidden_size)
    p["b_hh"] = _unif(ks[7], (hidden_size,), hidden_size)
    p["conv3_w"] = _unif(ks[8], (K, hidden_size, hidden_size), hidden_size * K)
    p["conv3_b"] = _unif(ks[9], (hidden_size,), hidden_size * K)
    # nn.Linear, torch layout: (O, H)
    p["fc_w"] = _unif(ks[10], (output_size, hidden_size), hidden_size)
    p["fc_b"] = _unif(ks[11], (output_size,), hidden_size)
    return p


def prepare_params(p):
    """Fold all transposes / bf16 casts into a one-time step; nothing layout-
    related executes inside the jitted forward."""
    kp = {}
    kp["conv1_w"] = p["conv1_w"].astype(jnp.bfloat16)               # (K, Cin, C1)
    kp["conv1_b"] = p["conv1_b"].reshape(1, -1)
    kp["conv2_w"] = p["conv2_w"].astype(jnp.bfloat16)               # (K, C1, C1)
    kp["conv2_b"] = p["conv2_b"].reshape(1, -1)
    kp["w_ih"] = p["w_ih"].T.astype(jnp.bfloat16)                   # (C1, H)
    kp["w_hh"] = p["w_hh"].T.astype(jnp.bfloat16)                   # (H, H)
    kp["b_rnn"] = (p["b_ih"] + p["b_hh"]).reshape(1, -1)
    # Only conv3 taps 0..2 contribute to output timestep T-1 (taps 3,4 hit zero pad).
    kp["conv3_w_last"] = p["conv3_w"][:3].astype(jnp.bfloat16)      # (3, H, H)
    kp["conv3_b"] = p["conv3_b"].reshape(1, -1)
    kp["fc_w"] = p["fc_w"].T.astype(jnp.bfloat16)                   # (H, O)
    kp["fc_b"] = p["fc_b"].reshape(1, -1)
    return kp


# -----------------------------------------------------------------------------
# Pure-JAX reference (cast=identity -> full f32 semantics;
#                     cast=bf16     -> mirrors the kernel's mixed precision).
# -----------------------------------------------------------------------------
def _conv1d_relu_ref(x, w, b, cast):
    K = w.shape[0]
    pad = (K - 1) // 2
    T = x.shape[1]
    xp = jnp.pad(cast(x), ((0, 0), (pad, pad), (0, 0)))
    acc = sum(jnp.einsum("btc,co->bto", xp[:, k:k + T, :], cast(w[k]),
                         preferred_element_type=jnp.float32) for k in range(K))
    return jnp.maximum(acc + b[None, None, :], 0.0)


def _rnn_ref(x, h0, w_ih, w_hh, b_ih, b_hh, cast):
    xproj = jnp.einsum("btc,ch->bth", cast(x), cast(w_ih.T),
                       preferred_element_type=jnp.float32) + (b_ih + b_hh)
    whh_t = cast(w_hh.T)

    def step(h, xp_t):
        h = jnp.tanh(xp_t + jnp.dot(cast(h), whh_t,
                                    preferred_element_type=jnp.float32))
        return h, h

    _, ys = lax.scan(step, h0, jnp.swapaxes(xproj, 0, 1))
    return jnp.swapaxes(ys, 0, 1)


def rnn_model_forward_ref(x, h0, p, cast=lambda v: v):
    h = _conv1d_relu_ref(x, p["conv1_w"], p["conv1_b"], cast)
    h = _conv1d_relu_ref(h, p["conv2_w"], p["conv2_b"], cast)
    out = _rnn_ref(h, h0, p["w_ih"], p["w_hh"], p["b_ih"], p["b_hh"], cast)
    out = _conv1d_relu_ref(out, p["conv3_w"], p["conv3_b"], cast)
    last = out[:, -1, :]
    return jnp.dot(cast(last), cast(p["fc_w"].T),
                   preferred_element_type=jnp.float32) + p["fc_b"]


# -----------------------------------------------------------------------------
if __name__ == "__main__":
    input_size, conv_size, hidden_size, output_size = 4, 16, 32, 3

    root = jax.random.PRNGKey(0)
    k_param, k_x, k_h, k_x2, k_h2 = jax.random.split(root, 5)

    params = init_params(k_param, input_size, conv_size, hidden_size, output_size)
    kparams = prepare_params(params)
    bf16 = lambda v: v.astype(jnp.bfloat16)

    # --- primary small-shape check (B=2, T=8) --------------------------------
    B, T = 2, 8
    x = jax.random.normal(k_x, (B, T, input_size), jnp.float32)
    # mirrors `hidden = torch.rand(num_layers, B, hidden_size)` (num_layers=1, squeezed)
    h0 = jax.random.uniform(k_h, (B, hidden_size), jnp.float32)

    out = jax.block_until_ready(rnn_model_forward(x, h0, kparams))
    ref_mixed = rnn_model_forward_ref(x, h0, params, cast=bf16)   # same bf16/f32 mix
    ref_f32 = rnn_model_forward_ref(x, h0, params)                # full-f32 semantics

    assert out.shape == (B, output_size), out.shape
    assert jnp.allclose(out, ref_mixed, atol=5e-3, rtol=5e-3), (out, ref_mixed)
    assert jnp.allclose(out, ref_f32, atol=5e-2, rtol=5e-2), (out, ref_f32)

    # --- second check: multi-step grid + batch padding (B=20, tile=8, T=16) ---
    B2, T2 = 20, 16
    x2 = jax.random.normal(k_x2, (B2, T2, input_size), jnp.float32)
    h02 = jax.random.uniform(k_h2, (B2, hidden_size), jnp.float32)

    out2 = jax.block_until_ready(rnn_model_forward(x2, h02, kparams, batch_tile=8))
    ref2_mixed = rnn_model_forward_ref(x2, h02, params, cast=bf16)
    ref2_f32 = rnn_model_forward_ref(x2, h02, params)

    assert out2.shape == (B2, output_size), out2.shape
    assert jnp.allclose(out2, ref2_mixed, atol=5e-3, rtol=5e-3), (out2, ref2_mixed)
    assert jnp.allclose(out2, ref2_f32, atol=5e-2, rtol=5e-2), (out2, ref2_f32)

    print("KERNEL_OK")
</pallas_src>

<mosaic_0001>
module attributes {stable_mosaic.version = 11 : i64} {
  func.func @_fused_rnn_forward_kernel(%arg0: i32, %arg1: memref<8x8x4xf32, #tpu.memory_space<vmem>>, %arg2: memref<8x32xf32, #tpu.memory_space<vmem>>, %arg3: memref<5x4x16xbf16, #tpu.memory_space<vmem>>, %arg4: memref<1x16xf32, #tpu.memory_space<vmem>>, %arg5: memref<5x16x16xbf16, #tpu.memory_space<vmem>>, %arg6: memref<1x16xf32, #tpu.memory_space<vmem>>, %arg7: memref<16x32xbf16, #tpu.memory_space<vmem>>, %arg8: memref<32x32xbf16, #tpu.memory_space<vmem>>, %arg9: memref<1x32xf32, #tpu.memory_space<vmem>>, %arg10: memref<3x32x32xbf16, #tpu.memory_space<vmem>>, %arg11: memref<1x32xf32, #tpu.memory_space<vmem>>, %arg12: memref<32x3xbf16, #tpu.memory_space<vmem>>, %arg13: memref<1x3xf32, #tpu.memory_space<vmem>>, %arg14: memref<8x3xf32, #tpu.memory_space<vmem>>, %arg15: memref<96x4xbf16, #tpu.memory_space<vmem>>, %arg16: memref<96x16xbf16, #tpu.memory_space<vmem>>, %arg17: memref<8x8x32xf32, #tpu.memory_space<vmem>>) attributes {dimension_semantics = [#tpu.dimension_semantics<parallel>], iteration_bounds = array<i64: 1>, scalar_prefetch = 0 : i64, scratch_operands = 3 : i64, tpu.core_type = #tpu.core_type<tc>, window_params = [{transform_indices = @transform_0, window_bounds = array<i64: 8, 8, 4>}, {transform_indices = @transform_1, window_bounds = array<i64: 8, 32>}, {pipeline_mode = #tpu.pipeline_mode<synchronous>, transform_indices = @transform_2, window_bounds = array<i64: 5, 4, 16>}, {pipeline_mode = #tpu.pipeline_mode<synchronous>, transform_indices = @transform_3, window_bounds = array<i64: 1, 16>}, {pipeline_mode = #tpu.pipeline_mode<synchronous>, transform_indices = @transform_4, window_bounds = array<i64: 5, 16, 16>}, {pipeline_mode = #tpu.pipeline_mode<synchronous>, transform_indices = @transform_5, window_bounds = array<i64: 1, 16>}, {pipeline_mode = #tpu.pipeline_mode<synchronous>, transform_indices = @transform_6, window_bounds = array<i64: 16, 32>}, {pipeline_mode = #tpu.pipeline_mode<synchronous>, transform_indices = @transform_7, window_bounds = array<i64: 32, 32>}, {pipeline_mode = #tpu.pipeline_mode<synchronous>, transform_indices = @transform_8, window_bounds = array<i64: 1, 32>}, {pipeline_mode = #tpu.pipeline_mode<synchronous>, transform_indices = @transform_9, window_bounds = array<i64: 3, 32, 32>}, {pipeline_mode = #tpu.pipeline_mode<synchronous>, transform_indices = @transform_10, window_bounds = array<i64: 1, 32>}, {pipeline_mode = #tpu.pipeline_mode<synchronous>, transform_indices = @transform_11, window_bounds = array<i64: 32, 3>}, {pipeline_mode = #tpu.pipeline_mode<synchronous>, transform_indices = @transform_12, window_bounds = array<i64: 1, 3>}, {transform_indices = @transform_13, window_bounds = array<i64: 8, 3>}]} {
    %cst = arith.constant 0.000000e+00 : bf16
    %0 = vector.broadcast %cst : bf16 to vector<16x4xbf16>
    %c0 = arith.constant 0 : index
    %c0_0 = arith.constant 0 : index
    %1 = vector.load %arg15[%c0, %c0_0] : memref<96x4xbf16, #tpu.memory_space<vmem>>, vector<16x4xbf16>
    tpu.vector_store %arg15[%c0, %c0_0], %0 {strides = array<i32>} : memref<96x4xbf16, #tpu.memory_space<vmem>>, vector<16x4xbf16>,
    %cst_1 = arith.constant 0.000000e+00 : bf16
    %2 = vector.broadcast %cst_1 : bf16 to vector<16x4xbf16>
    %c80 = arith.constant 80 : index
    %c0_2 = arith.constant 0 : index
    %3 = vector.load %arg15[%c80, %c0_2] : memref<96x4xbf16, #tpu.memory_space<vmem>>, vector<16x4xbf16>
    tpu.vector_store %arg15[%c80, %c0_2], %2 {strides = array<i32>} : memref<96x4xbf16, #tpu.memory_space<vmem>>, vector<16x4xbf16>,
    %c0_3 = arith.constant 0 : index
    %c0_4 = arith.constant 0 : index
    %c0_5 = arith.constant 0 : index
    %4 = vector.load %arg1[%c0_3, %c0_4, %c0_5] : memref<8x8x4xf32, #tpu.memory_space<vmem>>, vector<8x8x4xf32>
    %5 = vector.shape_cast %4 : vector<8x8x4xf32> to vector<64x4xf32>
    %6 = arith.truncf %5 : vector<64x4xf32> to vector<64x4xbf16>
    %c16 = arith.constant 16 : index
    %c0_6 = arith.constant 0 : index
    %7 = vector.load %arg15[%c16, %c0_6] : memref<96x4xbf16, #tpu.memory_space<vmem>>, vector<64x4xbf16>
    tpu.vector_store %arg15[%c16, %c0_6], %6 {strides = array<i32>} : memref<96x4xbf16, #tpu.memory_space<vmem>>, vector<64x4xbf16>,
    %cst_7 = arith.constant 0.000000e+00 : f32
    %8 = vector.broadcast %cst_7 : f32 to vector<64x16xf32>
    %c0_8 = arith.constant 0 : index
    %c0_9 = arith.constant 0 : index
    %9 = vector.load %arg15[%c0_8, %c0_9] : memref<96x4xbf16, #tpu.memory_space<vmem>>, vector<64x4xbf16>
    %c0_10 = arith.constant 0 : index
    %c0_11 = arith.constant 0 : index
    %c0_12 = arith.constant 0 : index
    %10 = vector.load %arg3[%c0_10, %c0_11, %c0_12] : memref<5x4x16xbf16, #tpu.memory_space<vmem>>, vector<1x4x16xbf16>
    %11 = vector.shape_cast %10 : vector<1x4x16xbf16> to vector<4x16xbf16>
    %cst_13 = arith.constant dense<0.000000e+00> : vector<64x16xf32>
    %12 = tpu.matmul %9, %11, %cst_13 {dimension_numbers = #tpu.dot_dimension_numbers<[1], [0], [0], [1], [0, 0, 1, 1], [], []>} : vector<64x4xbf16>, vector<4x16xbf16>, vector<64x16xf32> -> vector<64x16xf32>
    %13 = arith.addf %8, %12 : vector<64x16xf32>
    %c8 = arith.constant 8 : index
    %c0_14 = arith.constant 0 : index
    %14 = vector.load %arg15[%c8, %c0_14] : memref<96x4xbf16, #tpu.memory_space<vmem>>, vector<64x4xbf16>
    %c1 = arith.constant 1 : index
    %c0_15 = arith.constant 0 : index
    %c0_16 = arith.constant 0 : index
    %15 = vector.load %arg3[%c1, %c0_15, %c0_16] : memref<5x4x16xbf16, #tpu.memory_space<vmem>>, vector<1x4x16xbf16>
    %16 = vector.shape_cast %15 : vector<1x4x16xbf16> to vector<4x16xbf16>
    %cst_17 = arith.constant dense<0.000000e+00> : vector<64x16xf32>
    %17 = tpu.matmul %14, %16, %cst_17 {dimension_numbers = #tpu.dot_dimension_numbers<[1], [0], [0], [1], [0, 0, 1, 1], [], []>} : vector<64x4xbf16>, vector<4x16xbf16>, vector<64x16xf32> -> vector<64x16xf32>
    %18 = arith.addf %13, %17 : vector<64x16xf32>
    %c16_18 = arith.constant 16 : index
    %c0_19 = arith.constant 0 : index
    %19 = vector.load %arg15[%c16_18, %c0_19] : memref<96x4xbf16, #tpu.memory_space<vmem>>, vector<64x4xbf16>
    %c2 = arith.constant 2 : index
    %c0_20 = arith.constant 0 : index
    %c0_21 = arith.constant 0 : index
    %20 = vector.load %arg3[%c2, %c0_20, %c0_21] : memref<5x4x16xbf16, #tpu.memory_space<vmem>>, vector<1x4x16xbf16>
    %21 = vector.shape_cast %20 : vector<1x4x16xbf16> to vector<4x16xbf16>
    %cst_22 = arith.constant dense<0.000000e+00> : vector<64x16xf32>
    %22 = tpu.matmul %19, %21, %cst_22 {dimension_numbers = #tpu.dot_dimension_numbers<[1], [0], [0], [1], [0, 0, 1, 1], [], []>} : vector<64x4xbf16>, vector<4x16xbf16>, vector<64x16xf32> -> vector<64x16xf32>
    %23 = arith.addf %18, %22 : vector<64x16xf32>
    %c24 = arith.constant 24 : index
    %c0_23 = arith.constant 0 : index
    %24 = vector.load %arg15[%c24, %c0_23] : memref<96x4xbf16, #tpu.memory_space<vmem>>, vector<64x4xbf16>
    %c3 = arith.constant 3 : index
    %c0_24 = arith.constant 0 : index
    %c0_25 = arith.constant 0 : index
    %25 = vector.load %arg3[%c3, %c0_24, %c0_25] : memref<5x4x16xbf16, #tpu.memory_space<vmem>>, vector<1x4x16xbf16>
    %26 = vector.shape_cast %25 : vector<1x4x16xbf16> to vector<4x16xbf16>
    %cst_26 = arith.constant dense<0.000000e+00> : vector<64x16xf32>
    %27 = tpu.matmul %24, %26, %cst_26 {dimension_numbers = #tpu.dot_dimension_numbers<[1], [0], [0], [1], [0, 0, 1, 1], [], []>} : vector<64x4xbf16>, vector<4x16xbf16>, vector<64x16xf32> -> vector<64x16xf32>
    %28 = arith.addf %23, %27 : vector<64x16xf32>
    %c32 = arith.constant 32 : index
    %c0_27 = arith.constant 0 : index
    %29 = vector.load %arg15[%c32, %c0_27] : memref<96x4xbf16, #tpu.memory_space<vmem>>, vector<64x4xbf16>
    %c4 = arith.constant 4 : index
    %c0_28 = arith.constant 0 : index
    %c0_29 = arith.constant 0 : index
    %30 = vector.load %arg3[%c4, %c0_28, %c0_29] : memref<5x4x16xbf16, #tpu.memory_space<vmem>>, vector<1x4x16xbf16>
    %31 = vector.shape_cast %30 : vector<1x4x16xbf16> to vector<4x16xbf16>
    %cst_30 = arith.constant dense<0.000000e+00> : vector<64x16xf32>
    %32 = tpu.matmul %29, %31, %cst_30 {dimension_numbers = #tpu.dot_dimension_numbers<[1], [0], [0], [1], [0, 0, 1, 1], [], []>} : vector<64x4xbf16>, vector<4x16xbf16>, vector<64x16xf32> -> vector<64x16xf32>
    %33 = arith.addf %28, %32 : vector<64x16xf32>
    %c0_31 = arith.constant 0 : index
    %c0_32 = arith.constant 0 : index
    %34 = vector.load %arg4[%c0_31, %c0_32] : memref<1x16xf32, #tpu.memory_space<vmem>>, vector<1x16xf32>
    %35 = vector.broadcast %34 : vector<1x16xf32> to vector<64x16xf32>
    %36 = arith.addf %33, %35 : vector<64x16xf32>
    %cst_33 = arith.constant 0.000000e+00 : f32
    %37 = vector.broadcast %cst_33 : f32 to vector<64x16xf32>
    %38 = arith.maximumf %36, %37 : vector<64x16xf32>
    %cst_34 = arith.constant 0.000000e+00 : bf16
    %39 = vector.broadcast %cst_34 : bf16 to vector<16x16xbf16>
    %c0_35 = arith.constant 0 : index
    %c0_36 = arith.constant 0 : index
    %40 = vector.load %arg16[%c0_35, %c0_36] : memref<96x16xbf16, #tpu.memory_space<vmem>>, vector<16x16xbf16>
    tpu.vector_store %arg16[%c0_35, %c0_36], %39 {strides = array<i32>} : memref<96x16xbf16, #tpu.memory_space<vmem>>, vector<16x16xbf16>,
    %cst_37 = arith.constant 0.000000e+00 : bf16
    %41 = vector.broadcast %cst_37 : bf16 to vector<16x16xbf16>
    %c80_38 = arith.constant 80 : index
    %c0_39 = arith.constant 0 : index
    %42 = vector.load %arg16[%c80_38, %c0_39] : memref<96x16xbf16, #tpu.memory_space<vmem>>, vector<16x16xbf16>
    tpu.vector_store %arg16[%c80_38, %c0_39], %41 {strides = array<i32>} : memref<96x16xbf16, #tpu.memory_space<vmem>>, vector<16x16xbf16>,
    %43 = arith.truncf %38 : vector<64x16xf32> to vector<64x16xbf16>
    %c16_40 = arith.constant 16 : index
    %c0_41 = arith.constant 0 : index
    %44 = vector.load %arg16[%c16_40, %c0_41] : memref<96x16xbf16, #tpu.memory_space<vmem>>, vector<64x16xbf16>
    tpu.vector_store %arg16[%c16_40, %c0_41], %43 {strides = array<i32>} : memref<96x16xbf16, #tpu.memory_space<vmem>>, vector<64x16xbf16>,
    %cst_42 = arith.constant 0.000000e+00 : f32
    %45 = vector.broadcast %cst_42 : f32 to vector<64x16xf32>
    %c0_43 = arith.constant 0 : index
    %c0_44 = arith.constant 0 : index
    %46 = vector.load %arg16[%c0_43, %c0_44] : memref<96x16xbf16, #tpu.memory_space<vmem>>, vector<64x16xbf16>
    %c0_45 = arith.constant 0 : index
    %c0_46 = arith.constant 0 : index
    %c0_47 = arith.constant 0 : index
    %47 = vector.load %arg5[%c0_45, %c0_46, %c0_47] : memref<5x16x16xbf16, #tpu.memory_space<vmem>>, vector<1x16x16xbf16>
    %48 = vector.shape_cast %47 : vector<1x16x16xbf16> to vector<16x16xbf16>
    %cst_48 = arith.constant dense<0.000000e+00> : vector<64x16xf32>
    %49 = tpu.matmul %46, %48, %cst_48 {dimension_numbers = #tpu.dot_dimension_numbers<[1], [0], [0], [1], [0, 0, 1, 1], [], []>} : vector<64x16xbf16>, vector<16x16xbf16>, vector<64x16xf32> -> vector<64x16xf32>
    %50 = arith.addf %45, %49 : vector<64x16xf32>
    %c8_49 = arith.constant 8 : index
    %c0_50 = arith.constant 0 : index
    %51 = vector.load %arg16[%c8_49, %c0_50] : memref<96x16xbf16, #tpu.memory_space<vmem>>, vector<64x16xbf16>
    %c1_51 = arith.constant 1 : index
    %c0_52 = arith.constant 0 : index
    %c0_53 = arith.constant 0 : index
    %52 = vector.load %arg5[%c1_51, %c0_52, %c0_53] : memref<5x16x16xbf16, #tpu.memory_space<vmem>>, vector<1x16x16xbf16>
    %53 = vector.shape_cast %52 : vector<1x16x16xbf16> to vector<16x16xbf16>
    %cst_54 = arith.constant dense<0.000000e+00> : vector<64x16xf32>
    %54 = tpu.matmul %51, %53, %cst_54 {dimension_numbers = #tpu.dot_dimension_numbers<[1], [0], [0], [1], [0, 0, 1, 1], [], []>} : vector<64x16xbf16>, vector<16x16xbf16>, vector<64x16xf32> -> vector<64x16xf32>
    %55 = arith.addf %50, %54 : vector<64x16xf32>
    %c16_55 = arith.constant 16 : index
    %c0_56 = arith.constant 0 : index
    %56 = vector.load %arg16[%c16_55, %c0_56] : memref<96x16xbf16, #tpu.memory_space<vmem>>, vector<64x16xbf16>
    %c2_57 = arith.constant 2 : index
    %c0_58 = arith.constant 0 : index
    %c0_59 = arith.constant 0 : index
    %57 = vector.load %arg5[%c2_57, %c0_58, %c0_59] : memref<5x16x16xbf16, #tpu.memory_space<vmem>>, vector<1x16x16xbf16>
    %58 = vector.shape_cast %57 : vector<1x16x16xbf16> to vector<16x16xbf16>
    %cst_60 = arith.constant dense<0.000000e+00> : vector<64x16xf32>
    %59 = tpu.matmul %56, %58, %cst_60 {dimension_numbers = #tpu.dot_dimension_numbers<[1], [0], [0], [1], [0, 0, 1, 1], [], []>} : vector<64x16xbf16>, vector<16x16xbf16>, vector<64x16xf32> -> vector<64x16xf32>
    %60 = arith.addf %55, %59 : vector<64x16xf32>
    %c24_61 = arith.constant 24 : index
    %c0_62 = arith.constant 0 : index
    %61 = vector.load %arg16[%c24_61, %c0_62] : memref<96x16xbf16, #tpu.memory_space<vmem>>, vector<64x16xbf16>
    %c3_63 = arith.constant 3 : index
    %c0_64 = arith.constant 0 : index
    %c0_65 = arith.constant 0 : index
    %62 = vector.load %arg5[%c3_63, %c0_64, %c0_65] : memref<5x16x16xbf16, #tpu.memory_space<vmem>>, vector<1x16x16xbf16>
    %63 = vector.shape_cast %62 : vector<1x16x16xbf16> to vector<16x16xbf16>
    %cst_66 = arith.constant dense<0.000000e+00> : vector<64x16xf32>
    %64 = tpu.matmul %61, %63, %cst_66 {dimension_numbers = #tpu.dot_dimension_numbers<[1], [0], [0], [1], [0, 0, 1, 1], [], []>} : vector<64x16xbf16>, vector<16x16xbf16>, vector<64x16xf32> -> vector<64x16xf32>
    %65 = arith.addf %60, %64 : vector<64x16xf32>
    %c32_67 = arith.constant 32 : index
    %c0_68 = arith.constant 0 : index
    %66 = vector.load %arg16[%c32_67, %c0_68] : memref<96x16xbf16, #tpu.memory_space<vmem>>, vector<64x16xbf16>
    %c4_69 = arith.constant 4 : index
    %c0_70 = arith.constant 0 : index
    %c0_71 = arith.constant 0 : index
    %67 = vector.load %arg5[%c4_69, %c0_70, %c0_71] : memref<5x16x16xbf16, #tpu.memory_space<vmem>>, vector<1x16x16xbf16>
    %68 = vector.shape_cast %67 : vector<1x16x16xbf16> to vector<16x16xbf16>
    %cst_72 = arith.constant dense<0.000000e+00> : vector<64x16xf32>
    %69 = tpu.matmul %66, %68, %cst_72 {dimension_numbers = #tpu.dot_dimension_numbers<[1], [0], [0], [1], [0, 0, 1, 1], [], []>} : vector<64x16xbf16>, vector<16x16xbf16>, vector<64x16xf32> -> vector<64x16xf32>
    %70 = arith.addf %65, %69 : vector<64x16xf32>
    %c0_73 = arith.constant 0 : index
    %c0_74 = arith.constant 0 : index
    %71 = vector.load %arg6[%c0_73, %c0_74] : memref<1x16xf32, #tpu.memory_space<vmem>>, vector<1x16xf32>
    %72 = vector.broadcast %71 : vector<1x16xf32> to vector<64x16xf32>
    %73 = arith.addf %70, %72 : vector<64x16xf32>
    %cst_75 = arith.constant 0.000000e+00 : f32
    %74 = vector.broadcast %cst_75 : f32 to vector<64x16xf32>
    %75 = arith.maximumf %73, %74 : vector<64x16xf32>
    %76 = arith.truncf %75 : vector<64x16xf32> to vector<64x16xbf16>
    %c0_76 = arith.constant 0 : index
    %c0_77 = arith.constant 0 : index
    %77 = vector.load %arg7[%c0_76, %c0_77] : memref<16x32xbf16, #tpu.memory_space<vmem>>, vector<16x32xbf16>
    %cst_78 = arith.constant dense<0.000000e+00> : vector<64x32xf32>
    %78 = tpu.matmul %76, %77, %cst_78 {dimension_numbers = #tpu.dot_dimension_numbers<[1], [0], [0], [1], [0, 0, 1, 1], [], []>} : vector<64x16xbf16>, vector<16x32xbf16>, vector<64x32xf32> -> vector<64x32xf32>
    %c0_79 = arith.constant 0 : index
    %c0_80 = arith.constant 0 : index
    %79 = vector.load %arg9[%c0_79, %c0_80] : memref<1x32xf32, #tpu.memory_space<vmem>>, vector<1x32xf32>
    %80 = vector.broadcast %79 : vector<1x32xf32> to vector<64x32xf32>
    %81 = arith.addf %78, %80 : vector<64x32xf32>
    %82 = vector.shape_cast %81 : vector<64x32xf32> to vector<8x8x32xf32>
    %c0_81 = arith.constant 0 : index
    %c0_82 = arith.constant 0 : index
    %c0_83 = arith.constant 0 : index
    %83 = vector.load %arg17[%c0_81, %c0_82, %c0_83] : memref<8x8x32xf32, #tpu.memory_space<vmem>>, vector<8x8x32xf32>
    tpu.vector_store %arg17[%c0_81, %c0_82, %c0_83], %82 {strides = array<i32>} : memref<8x8x32xf32, #tpu.memory_space<vmem>>, vector<8x8x32xf32>,
    %c0_84 = arith.constant 0 : index
    %c0_85 = arith.constant 0 : index
    %84 = vector.load %arg2[%c0_84, %c0_85] : memref<8x32xf32, #tpu.memory_space<vmem>>, vector<8x32xf32>
    %cst_86 = arith.constant 0.000000e+00 : f32
    %85 = vector.broadcast %cst_86 : f32 to vector<8x32xf32>
    %c0_i32 = arith.constant 0 : i32
    %86 = arith.index_cast %c0_i32 : i32 to index
    %c0_87 = arith.constant 0 : index
    %c0_88 = arith.constant 0 : index
    %87 = vector.load %arg17[%86, %c0_87, %c0_88] : memref<8x8x32xf32, #tpu.memory_space<vmem>>, vector<1x8x32xf32>
    %88 = vector.shape_cast %87 : vector<1x8x32xf32> to vector<8x32xf32>
    %89 = arith.truncf %84 : vector<8x32xf32> to vector<8x32xbf16>
    %c0_89 = arith.constant 0 : index
    %c0_90 = arith.constant 0 : index
    %90 = vector.load %arg8[%c0_89, %c0_90] : memref<32x32xbf16, #tpu.memory_space<vmem>>, vector<32x32xbf16>
    %cst_91 = arith.constant dense<0.000000e+00> : vector<8x32xf32>
    %91 = tpu.matmul %89, %90, %cst_91 {dimension_numbers = #tpu.dot_dimension_numbers<[1], [0], [0], [1], [0, 0, 1, 1], [], []>} : vector<8x32xbf16>, vector<32x32xbf16>, vector<8x32xf32> -> vector<8x32xf32>
    %92 = arith.addf %88, %91 : vector<8x32xf32>
    %93 = math.tanh %92 : vector<8x32xf32>
    %c1_i32 = arith.constant 1 : i32
    %94 = arith.index_cast %c1_i32 : i32 to index
    %c0_92 = arith.constant 0 : index
    %c0_93 = arith.constant 0 : index
    %95 = vector.load %arg17[%94, %c0_92, %c0_93] : memref<8x8x32xf32, #tpu.memory_space<vmem>>, vector<1x8x32xf32>
    %96 = vector.shape_cast %95 : vector<1x8x32xf32> to vector<8x32xf32>
    %97 = arith.truncf %93 : vector<8x32xf32> to vector<8x32xbf16>
    %c0_94 = arith.constant 0 : index
    %c0_95 = arith.constant 0 : index
    %98 = vector.load %arg8[%c0_94, %c0_95] : memref<32x32xbf16, #tpu.memory_space<vmem>>, vector<32x32xbf16>
    %cst_96 = arith.constant dense<0.000000e+00> : vector<8x32xf32>
    %99 = tpu.matmul %97, %98, %cst_96 {dimension_numbers = #tpu.dot_dimension_numbers<[1], [0], [0], [1], [0, 0, 1, 1], [], []>} : vector<8x32xbf16>, vector<32x32xbf16>, vector<8x32xf32> -> vector<8x32xf32>
    %100 = arith.addf %96, %99 : vector<8x32xf32>
    %101 = math.tanh %100 : vector<8x32xf32>
    %c2_i32 = arith.constant 2 : i32
    %102 = arith.index_cast %c2_i32 : i32 to index
    %c0_97 = arith.constant 0 : index
    %c0_98 = arith.constant 0 : index
    %103 = vector.load %arg17[%102, %c0_97, %c0_98] : memref<8x8x32xf32, #tpu.memory_space<vmem>>, vector<1x8x32xf32>
    %104 = vector.shape_cast %103 : vector<1x8x32xf32> to vector<8x32xf32>
    %105 = arith.truncf %101 : vector<8x32xf32> to vector<8x32xbf16>
    %c0_99 = arith.constant 0 : index
    %c0_100 = arith.constant 0 : index
    %106 = vector.load %arg8[%c0_99, %c0_100] : memref<32x32xbf16, #tpu.memory_space<vmem>>, vector<32x32xbf16>
    %cst_101 = arith.constant dense<0.000000e+00> : vector<8x32xf32>
    %107 = tpu.matmul %105, %106, %cst_101 {dimension_numbers = #tpu.dot_dimension_numbers<[1], [0], [0], [1], [0, 0, 1, 1], [], []>} : vector<8x32xbf16>, vector<32x32xbf16>, vector<8x32xf32> -> vector<8x32xf32>
    %108 = arith.addf %104, %107 : vector<8x32xf32>
    %109 = math.tanh %108 : vector<8x32xf32>
    %c3_i32 = arith.constant 3 : i32
    %110 = arith.index_cast %c3_i32 : i32 to index
    %c0_102 = arith.constant 0 : index
    %c0_103 = arith.constant 0 : index
    %111 = vector.load %arg17[%110, %c0_102, %c0_103] : memref<8x8x32xf32, #tpu.memory_space<vmem>>, vector<1x8x32xf32>
    %112 = vector.shape_cast %111 : vector<1x8x32xf32> to vector<8x32xf32>
    %113 = arith.truncf %109 : vector<8x32xf32> to vector<8x32xbf16>
    %c0_104 = arith.constant 0 : index
    %c0_105 = arith.constant 0 : index
    %114 = vector.load %arg8[%c0_104, %c0_105] : memref<32x32xbf16, #tpu.memory_space<vmem>>, vector<32x32xbf16>
    %cst_106 = arith.constant dense<0.000000e+00> : vector<8x32xf32>
    %115 = tpu.matmul %113, %114, %cst_106 {dimension_numbers = #tpu.dot_dimension_numbers<[1], [0], [0], [1], [0, 0, 1, 1], [], []>} : vector<8x32xbf16>, vector<32x32xbf16>, vector<8x32xf32> -> vector<8x32xf32>
    %116 = arith.addf %112, %115 : vector<8x32xf32>
    %117 = math.tanh %116 : vector<8x32xf32>
    %c4_i32 = arith.constant 4 : i32
    %118 = arith.index_cast %c4_i32 : i32 to index
    %c0_107 = arith.constant 0 : index
    %c0_108 = arith.constant 0 : index
    %119 = vector.load %arg17[%118, %c0_107, %c0_108] : memref<8x8x32xf32, #tpu.memory_space<vmem>>, vector<1x8x32xf32>
    %120 = vector.shape_cast %119 : vector<1x8x32xf32> to vector<8x32xf32>
    %121 = arith.truncf %117 : vector<8x32xf32> to vector<8x32xbf16>
    %c0_109 = arith.constant 0 : index
    %c0_110 = arith.constant 0 : index
    %122 = vector.load %arg8[%c0_109, %c0_110] : memref<32x32xbf16, #tpu.memory_space<vmem>>, vector<32x32xbf16>
    %cst_111 = arith.constant dense<0.000000e+00> : vector<8x32xf32>
    %123 = tpu.matmul %121, %122, %cst_111 {dimension_numbers = #tpu.dot_dimension_numbers<[1], [0], [0], [1], [0, 0, 1, 1], [], []>} : vector<8x32xbf16>, vector<32x32xbf16>, vector<8x32xf32> -> vector<8x32xf32>
    %124 = arith.addf %120, %123 : vector<8x32xf32>
    %125 = math.tanh %124 : vector<8x32xf32>
    %c5_i32 = arith.constant 5 : i32
    %126 = arith.index_cast %c5_i32 : i32 to index
    %c0_112 = arith.constant 0 : index
    %c0_113 = arith.constant 0 : index
    %127 = vector.load %arg17[%126, %c0_112, %c0_113] : memref<8x8x32xf32, #tpu.memory_space<vmem>>, vector<1x8x32xf32>
    %128 = vector.shape_cast %127 : vector<1x8x32xf32> to vector<8x32xf32>
    %129 = arith.truncf %125 : vector<8x32xf32> to vector<8x32xbf16>
    %c0_114 = arith.constant 0 : index
    %c0_115 = arith.constant 0 : index
    %130 = vector.load %arg8[%c0_114, %c0_115] : memref<32x32xbf16, #tpu.memory_space<vmem>>, vector<32x32xbf16>
    %cst_116 = arith.constant dense<0.000000e+00> : vector<8x32xf32>
    %131 = tpu.matmul %129, %130, %cst_116 {dimension_numbers = #tpu.dot_dimension_numbers<[1], [0], [0], [1], [0, 0, 1, 1], [], []>} : vector<8x32xbf16>, vector<32x32xbf16>, vector<8x32xf32> -> vector<8x32xf32>
    %132 = arith.addf %128, %131 : vector<8x32xf32>
    %133 = math.tanh %132 : vector<8x32xf32>
    %c6_i32 = arith.constant 6 : i32
    %134 = arith.index_cast %c6_i32 : i32 to index
    %c0_117 = arith.constant 0 : index
    %c0_118 = arith.constant 0 : index
    %135 = vector.load %arg17[%134, %c0_117, %c0_118] : memref<8x8x32xf32, #tpu.memory_space<vmem>>, vector<1x8x32xf32>
    %136 = vector.shape_cast %135 : vector<1x8x32xf32> to vector<8x32xf32>
    %137 = arith.truncf %133 : vector<8x32xf32> to vector<8x32xbf16>
    %c0_119 = arith.constant 0 : index
    %c0_120 = arith.constant 0 : index
    %138 = vector.load %arg8[%c0_119, %c0_120] : memref<32x32xbf16, #tpu.memory_space<vmem>>, vector<32x32xbf16>
    %cst_121 = arith.constant dense<0.000000e+00> : vector<8x32xf32>
    %139 = tpu.matmul %137, %138, %cst_121 {dimension_numbers = #tpu.dot_dimension_numbers<[1], [0], [0], [1], [0, 0, 1, 1], [], []>} : vector<8x32xbf16>, vector<32x32xbf16>, vector<8x32xf32> -> vector<8x32xf32>
    %140 = arith.addf %136, %139 : vector<8x32xf32>
    %141 = math.tanh %140 : vector<8x32xf32>
    %c7_i32 = arith.constant 7 : i32
    %142 = arith.index_cast %c7_i32 : i32 to index
    %c0_122 = arith.constant 0 : index
    %c0_123 = arith.constant 0 : index
    %143 = vector.load %arg17[%142, %c0_122, %c0_123] : memref<8x8x32xf32, #tpu.memory_space<vmem>>, vector<1x8x32xf32>
    %144 = vector.shape_cast %143 : vector<1x8x32xf32> to vector<8x32xf32>
    %145 = arith.truncf %141 : vector<8x32xf32> to vector<8x32xbf16>
    %c0_124 = arith.constant 0 : index
    %c0_125 = arith.constant 0 : index
    %146 = vector.load %arg8[%c0_124, %c0_125] : memref<32x32xbf16, #tpu.memory_space<vmem>>, vector<32x32xbf16>
    %cst_126 = arith.constant dense<0.000000e+00> : vector<8x32xf32>
    %147 = tpu.matmul %145, %146, %cst_126 {dimension_numbers = #tpu.dot_dimension_numbers<[1], [0], [0], [1], [0, 0, 1, 1], [], []>} : vector<8x32xbf16>, vector<32x32xbf16>, vector<8x32xf32> -> vector<8x32xf32>
    %148 = arith.addf %144, %147 : vector<8x32xf32>
    %149 = math.tanh %148 : vector<8x32xf32>
    %c8_i32 = arith.constant 8 : i32
    %150 = arith.truncf %133 : vector<8x32xf32> to vector<8x32xbf16>
    %c0_127 = arith.constant 0 : index
    %c0_128 = arith.constant 0 : index
    %c0_129 = arith.constant 0 : index
    %151 = vector.load %arg10[%c0_127, %c0_128, %c0_129] : memref<3x32x32xbf16, #tpu.memory_space<vmem>>, vector<1x32x32xbf16>
    %152 = vector.shape_cast %151 : vector<1x32x32xbf16> to vector<32x32xbf16>
    %cst_130 = arith.constant dense<0.000000e+00> : vector<8x32xf32>
    %153 = tpu.matmul %150, %152, %cst_130 {dimension_numbers = #tpu.dot_dimension_numbers<[1], [0], [0], [1], [0, 0, 1, 1], [], []>} : vector<8x32xbf16>, vector<32x32xbf16>, vector<8x32xf32> -> vector<8x32xf32>
    %154 = arith.truncf %141 : vector<8x32xf32> to vector<8x32xbf16>
    %c1_131 = arith.constant 1 : index
    %c0_132 = arith.constant 0 : index
    %c0_133 = arith.constant 0 : index
    %155 = vector.load %arg10[%c1_131, %c0_132, %c0_133] : memref<3x32x32xbf16, #tpu.memory_space<vmem>>, vector<1x32x32xbf16>
    %156 = vector.shape_cast %155 : vector<1x32x32xbf16> to vector<32x32xbf16>
    %cst_134 = arith.constant dense<0.000000e+00> : vector<8x32xf32>
    %157 = tpu.matmul %154, %156, %cst_134 {dimension_numbers = #tpu.dot_dimension_numbers<[1], [0], [0], [1], [0, 0, 1, 1], [], []>} : vector<8x32xbf16>, vector<32x32xbf16>, vector<8x32xf32> -> vector<8x32xf32>
    %158 = arith.addf %153, %157 : vector<8x32xf32>
    %159 = arith.truncf %149 : vector<8x32xf32> to vector<8x32xbf16>
    %c2_135 = arith.constant 2 : index
    %c0_136 = arith.constant 0 : index
    %c0_137 = arith.constant 0 : index
    %160 = vector.load %arg10[%c2_135, %c0_136, %c0_137] : memref<3x32x32xbf16, #tpu.memory_space<vmem>>, vector<1x32x32xbf16>
    %161 = vector.shape_cast %160 : vector<1x32x32xbf16> to vector<32x32xbf16>
    %cst_138 = arith.constant dense<0.000000e+00> : vector<8x32xf32>
    %162 = tpu.matmul %159, %161, %cst_138 {dimension_numbers = #tpu.dot_dimension_numbers<[1], [0], [0], [1], [0, 0, 1, 1], [], []>} : vector<8x32xbf16>, vector<32x32xbf16>, vector<8x32xf32> -> vector<8x32xf32>
    %163 = arith.addf %158, %162 : vector<8x32xf32>
    %c0_139 = arith.constant 0 : index
    %c0_140 = arith.constant 0 : index
    %164 = vector.load %arg11[%c0_139, %c0_140] : memref<1x32xf32, #tpu.memory_space<vmem>>, vector<1x32xf32>
    %165 = vector.broadcast %164 : vector<1x32xf32> to vector<8x32xf32>
    %166 = arith.addf %163, %165 : vector<8x32xf32>
    %cst_141 = arith.constant 0.000000e+00 : f32
    %167 = vector.broadcast %cst_141 : f32 to vector<8x32xf32>
    %168 = arith.maximumf %166, %167 : vector<8x32xf32>
    %169 = arith.truncf %168 : vector<8x32xf32> to vector<8x32xbf16>
    %c0_142 = arith.constant 0 : index
    %c0_143 = arith.constant 0 : index
    %170 = vector.load %arg12[%c0_142, %c0_143] : memref<32x3xbf16, #tpu.memory_space<vmem>>, vector<32x3xbf16>
    %cst_144 = arith.constant dense<0.000000e+00> : vector<8x3xf32>
    %171 = tpu.matmul %169, %170, %cst_144 {dimension_numbers = #tpu.dot_dimension_numbers<[1], [0], [0], [1], [0, 0, 1, 1], [], []>} : vector<8x32xbf16>, vector<32x3xbf16>, vector<8x3xf32> -> vector<8x3xf32>
    %c0_145 = arith.constant 0 : index
    %c0_146 = arith.constant 0 : index
    %172 = vector.load %arg13[%c0_145, %c0_146] : memref<1x3xf32, #tpu.memory_space<vmem>>, vector<1x3xf32>
    %173 = vector.broadcast %172 : vector<1x3xf32> to vector<8x3xf32>
    %174 = arith.addf %171, %173 : vector<8x3xf32>
    %c0_147 = arith.constant 0 : index
    %c0_148 = arith.constant 0 : index
    %175 = vector.load %arg14[%c0_147, %c0_148] : memref<8x3xf32, #tpu.memory_space<vmem>>, vector<8x3xf32>
    tpu.vector_store %arg14[%c0_147, %c0_148], %174 {strides = array<i32>} : memref<8x3xf32, #tpu.memory_space<vmem>>, vector<8x3xf32>,
    return
  }
  func.func @transform_0(%arg0: i32) -> (i32, i32, i32) {
    %c0_i32 = arith.constant 0 : i32
    %c0_i32_0 = arith.constant 0 : i32
    %c0_i32_1 = arith.constant 0 : i32
    return %c0_i32, %arg0, %c0_i32_0 : i32, i32, i32
  }
  func.func @transform_1(%arg0: i32) -> (i32, i32) {
    %c0_i32 = arith.constant 0 : i32
    %c0_i32_0 = arith.constant 0 : i32
    return %arg0, %c0_i32 : i32, i32
  }
  func.func @transform_2(%arg0: i32) -> (i32, i32, i32) {
    %c0_i32 = arith.constant 0 : i32
    %c0_i32_0 = arith.constant 0 : i32
    %c0_i32_1 = arith.constant 0 : i32
    %c0_i32_2 = arith.constant 0 : i32
    return %c0_i32, %c0_i32_0, %c0_i32_1 : i32, i32, i32
  }
  func.func @transform_3(%arg0: i32) -> (i32, i32) {
    %c0_i32 = arith.constant 0 : i32
    %c0_i32_0 = arith.constant 0 : i32
    %c0_i32_1 = arith.constant 0 : i32
    return %c0_i32, %c0_i32_0 : i32, i32
  }
  func.func @transform_4(%arg0: i32) -> (i32, i32, i32) {
    %c0_i32 = arith.constant 0 : i32
    %c0_i32_0 = arith.constant 0 : i32
    %c0_i32_1 = arith.constant 0 : i32
    %c0_i32_2 = arith.constant 0 : i32
    return %c0_i32, %c0_i32_0, %c0_i32_1 : i32, i32, i32
  }
  func.func @transform_5(%arg0: i32) -> (i32, i32) {
    %c0_i32 = arith.constant 0 : i32
    %c0_i32_0 = arith.constant 0 : i32
    %c0_i32_1 = arith.constant 0 : i32
    return %c0_i32, %c0_i32_0 : i32, i32
  }
  func.func @transform_6(%arg0: i32) -> (i32, i32) {
    %c0_i32 = arith.constant 0 : i32
    %c0_i32_0 = arith.constant 0 : i32
    %c0_i32_1 = arith.constant 0 : i32
    return %c0_i32, %c0_i32_0 : i32, i32
  }
  func.func @transform_7(%arg0: i32) -> (i32, i32) {
    %c0_i32 = arith.constant 0 : i32
    %c0_i32_0 = arith.constant 0 : i32
    %c0_i32_1 = arith.constant 0 : i32
    return %c0_i32, %c0_i32_0 : i32, i32
  }
  func.func @transform_8(%arg0: i32) -> (i32, i32) {
    %c0_i32 = arith.constant 0 : i32
    %c0_i32_0 = arith.constant 0 : i32
    %c0_i32_1 = arith.constant 0 : i32
    return %c0_i32, %c0_i32_0 : i32, i32
  }
  func.func @transform_9(%arg0: i32) -> (i32, i32, i32) {
    %c0_i32 = arith.constant 0 : i32
    %c0_i32_0 = arith.constant 0 : i32
    %c0_i32_1 = arith.constant 0 : i32
    %c0_i32_2 = arith.constant 0 : i32
    return %c0_i32, %c0_i32_0, %c0_i32_1 : i32, i32, i32
  }
  func.func @transform_10(%arg0: i32) -> (i32, i32) {
    %c0_i32 = arith.constant 0 : i32
    %c0_i32_0 = arith.constant 0 : i32
    %c0_i32_1 = arith.constant 0 : i32
    return %c0_i32, %c0_i32_0 : i32, i32
  }
  func.func @transform_11(%arg0: i32) -> (i32, i32) {
    %c0_i32 = arith.constant 0 : i32
    %c0_i32_0 = arith.constant 0 : i32
    %c0_i32_1 = arith.constant 0 : i32
    return %c0_i32, %c0_i32_0 : i32, i32
  }
  func.func @transform_12(%arg0: i32) -> (i32, i32) {
    %c0_i32 = arith.constant 0 : i32
    %c0_i32_0 = arith.constant 0 : i32
    %c0_i32_1 = arith.constant 0 : i32
    return %c0_i32, %c0_i32_0 : i32, i32
  }
  func.func @transform_13(%arg0: i32) -> (i32, i32) {
    %c0_i32 = arith.constant 0 : i32
    %c0_i32_0 = arith.constant 0 : i32
    return %arg0, %c0_i32 : i32, i32
  }
}

</mosaic_0001>

<bundles_post_ra>
// kernel: rnn_model_forward.1
= control target key start
LH: loop header
LB: loop body
LE: loop exit
PB: predicated region body
PF: predicated region fallthrough
CT: control target
= control target key end

     0   :  { %vm119_vm0 = vcmask 1041408   ;;  %vm45_vm1 = vcmask 27648   ;;  %v1687_v9 = vmov 0   ;;  %vm106_vm2 = vcmask 31744   ;;  %s2028_s2 = inlined_call_operand.vmem [shape: bf16[5,4,16], index: 2, kind: input, shape index: {}]   ;;  %s2029_s0 = inlined_call_operand.vmem [shape: f32[8,8,4], index: 0, kind: input, shape index: {}]   ;;  %s2030_s3 = inlined_call_operand.vmem [shape: f32[1,16], index: 3, kind: input, shape index: {}]   ;;  %s2031_s4 = inlined_call_operand.vmem [shape: bf16[5,16,16], index: 4, kind: input, shape index: {}]   ;;  %s2032_s5 = inlined_call_operand.vmem [shape: f32[1,16], index: 5, kind: input, shape index: {}]   ;;  %s2033_s6 = inlined_call_operand.vmem [shape: bf16[16,32], index: 6, kind: input, shape index: {}]   ;;  %s2034_s7 = inlined_call_operand.vmem [shape: bf16[32,32], index: 7, kind: input, shape index: {}]   ;;  %s2035_s8 = inlined_call_operand.vmem [shape: f32[1,32], index: 8, kind: input, shape index: {}]   ;;  %s2036_s1 = inlined_call_operand.vmem [shape: f32[8,32], index: 1, kind: input, shape index: {}]   ;;  %s2037_s9 = inlined_call_operand.vmem [shape: bf16[3,32,32], index: 9, kind: input, shape index: {}]   ;;  %s2038_s10 = inlined_call_operand.vmem [shape: f32[1,32], index: 10, kind: input, shape index: {}]   ;;  %s2039_s11 = inlined_call_operand.vmem [shape: bf16[32,3], index: 11, kind: input, shape index: {}]   ;;  %s2040_s12 = inlined_call_operand.vmem [shape: f32[1,3], index: 12, kind: input, shape index: {}]   ;;  %s2041_s13 = inlined_call_operand.vmem [shape: f32[8,3], index: 13, kind: output, shape index: {}]  }
   0x1   :  { %v1295_v0 = vld [vmem:[%s2028_s2 + $0x2] sm:$0x3]  ;;  %v82_v1 = vld [vmem:[%s2028_s2] sm:$0x3]  ;;  %v1304_v2 = vld [vmem:[%s2028_s2 + $0x4] sm:$0x3] }
   0x2   :  { %v121_v3 = vsel %vm119_vm0, %v1295_v0, 0  ;;  %v171_v4 = vsel %vm119_vm0, %v82_v1, 0  ;;  %v245_v5 = vsel %vm119_vm0, %v1304_v2, 0  ;;  %v1325_v6 = vld [vmem:[%s2028_s2 + $0x6] sm:$0x3]  ;;  %v51_v11 = vld [vmem:[%s2029_s0 + $0x8] sm:$0xff] }
   0x3   :  { %v50_v7 = vld [vmem:[%s2029_s0] sm:$0xff]  ;;  %130 = vmatpush.bf16.msra.mxu0 %v121_v3  ;;  %180 = vmatpush.bf16.msra.mxu1 %v171_v4  ;;  %v327_v8 = vsel %vm119_vm0, %v1325_v6, 0  ;;  %47 = vst.msk [vmem:[#allocation2 + $0x4] sm:$0xf] %vm45_vm1, %v1687_v9  ;;  %v1346_v12 = vld [vmem:[%s2028_s2 + $0x8] sm:$0x3]  ;;  %v59_v13 = vpack.c.bf16 %v51_v11, %v51_v11 }
   0x4   :  { %v58_v10 = vpack.c.bf16 %v50_v7, %v50_v7  ;;  %254 = vmatpush.bf16.msra.mxu2 %v245_v5  ;;  %336 = vmatpush.bf16.msra.mxu3 %v327_v8  ;;  %46 = vst.msk [vmem:[#allocation2] sm:$0xf] %vm45_vm1, %v1687_v9  ;;  %v409_v14 = vsel %vm119_vm0, %v1346_v12, 0  ;;  %v52_v15 = vld [vmem:[%s2029_s0 + $0x10] sm:$0xff]  ;;  %v53_v16 = vld [vmem:[%s2029_s0 + $0x18] sm:$0xff]  ;;  %v54_v17 = vld [vmem:[%s2029_s0 + $0x20] sm:$0xff] }
   0x5   :  { %v60_v18 = vpack.c.bf16 %v52_v15, %v52_v15  ;;  %v55_v19 = vld [vmem:[%s2029_s0 + $0x28] sm:$0xff]  ;;  %48 = vst.msk [vmem:[#allocation2 + $0x28] sm:$0xf] %vm45_vm1, %v1687_v9  ;;  %v61_v20 = vpack.c.bf16 %v53_v16, %v53_v16  ;;  %v62_v21 = vpack.c.bf16 %v54_v17, %v54_v17  ;;  %v56_v22 = vld [vmem:[%s2029_s0 + $0x30] sm:$0xff]  ;;  %v57_v29 = vld [vmem:[%s2029_s0 + $0x38] sm:$0xff]  ;;  %vm468_vm3 = vcmask 125952  }
   0x6   :  { %66 = vst.msk [vmem:[#allocation2 + $0x8] sm:$0xf] %vm45_vm1, %v58_v10  ;;  %v63_v23 = vpack.c.bf16 %v55_v19, %v55_v19  ;;  %v64_v24 = vpack.c.bf16 %v56_v22, %v56_v22  ;;  %v65_v30 = vpack.c.bf16 %v57_v29, %v57_v29  ;;  %v1544_v47 = vld [vmem:[%s2031_s4 + $0x8] sm:$0xff]  ;;  %v1543_v53 = vld [vmem:[%s2031_s4] sm:$0xff]  ;;  %vm529_vm4 = vcmask 130048   ;;  %v1549_v60 = vld [vmem:[%s2031_s4 + $0x10] sm:$0xff] }
   0x7   :  { %418 = vmatpush.bf16.msrb.mxu0 %v409_v14  ;;  %49 = vst.msk [vmem:[#allocation2 + $0x2c] sm:$0xf] %vm45_vm1, %v1687_v9  ;;  %549 = vmatpush.bf16.msrb.mxu1 %v1544_v47  ;;  %v1554_v2 = vld [vmem:[%s2031_s4 + $0x18] sm:$0xff]  ;;  %v1559_v3 = vld [vmem:[%s2031_s4 + $0x20] sm:$0xff]  ;;  %vm959_vm5 = vcmask 261120   ;;  %vm1289_vm6 = vcmask 23552  }
   0x8   :  { %67 = vst.msk [vmem:[#allocation2 + $0xc] sm:$0xf] %vm45_vm1, %v59_v13  ;;  %602 = vmatpush.bf16.msrb.mxu2 %v1543_v53  ;;  %680 = vmatpush.bf16.msrb.mxu3 %v1549_v60  ;;  %v1873_v8 = vld [vmem:[%s2030_s3] ss:$0 sm:$0xff] }
   0x9   :  { %68 = vst.msk [vmem:[#allocation2 + $0x10] sm:$0xf] %vm45_vm1, %v60_v18 }
   0xa   :  { %69 = vst.msk [vmem:[#allocation2 + $0x14] sm:$0xf] %vm45_vm1, %v61_v20 }
   0xb   :  { %v1572_v25 = vld [vmem:[#allocation2] sm:$0xff]   ;;  %70 = vst.msk [vmem:[#allocation2 + $0x18] sm:$0xf] %vm45_vm1, %v62_v21 }
   0xc   :  { %1300 = vmatmul.msk.bf16.vlgmr.msra.gmra.mxu1 %vm106_vm2, %v1572_v25  ;;  %71 = vst.msk [vmem:[#allocation2 + $0x1c] sm:$0xf] %vm45_vm1, %v63_v23 }
   0xd   :  { %v1651_v26 = vld [vmem:[#allocation2 + $0x4] sm:$0xff]   ;;  %72 = vst.msk [vmem:[#allocation2 + $0x20] sm:$0xf] %vm45_vm1, %v64_v24  ;;  %852 = vmatpush.bf16.msra.mxu1 %v1559_v3 }
   0xe   :  { %1296 = vmatmul.msk.bf16.vlgmr.msra.gmra.mxu0 %vm106_vm2, %v1651_v26  ;;  %73 = vst.msk [vmem:[#allocation2 + $0x24] sm:$0xf] %vm45_vm1, %v65_v30  ;;  %v1542_v46 = vld [vmem:[#allocation2 + $0x28] sm:$0xff] }
   0xf   :  { %v1531_v27 = vld [vmem:[#allocation2 + $0x8] sm:$0xff]  ;;  %469 = vst.msk [vmem:[#allocation3] sm:$0xf] %vm468_vm3, %v1687_v9  ;;  %766 = vmatpush.bf16.msra.mxu0 %v1554_v2 }
  0x10   :  { %v1535_v28 = vld [vmem:[#allocation2 + $0xc] sm:$0xff]  ;;  %1321 = vmatmul.msk.bf16.vlgmr.msra.gmra.mxu2 %vm106_vm2, %v1531_v27  ;;  %470 = vst.msk [vmem:[#allocation3 + $0x4] sm:$0xf] %vm468_vm3, %v1687_v9 }
  0x11   :  { %1342 = vmatmul.msk.bf16.vlgmr.msra.gmra.mxu3 %vm106_vm2, %v1535_v28  ;;  %v1603_v31 = vld [vmem:[#allocation2 + $0x8] sm:$0xff]   ;;  %v1532_v33 = vld [vmem:[#allocation2 + $0x10] sm:$0xff]  ;;  %471 = vst.msk [vmem:[#allocation3 + $0x28] sm:$0xf] %vm468_vm3, %v1687_v9 }
  0x12   :  { %v1653_v32 = vld [vmem:[#allocation2 + $0xc] sm:$0xff]   ;;  %v1536_v34 = vld [vmem:[#allocation2 + $0x14] sm:$0xff]  ;;  %472 = vst.msk [vmem:[#allocation3 + $0x2c] sm:$0xf] %vm468_vm3, %v1687_v9 }
  0x13   :  { %v1604_v35 = vld [vmem:[#allocation2 + $0x10] sm:$0xff]   ;;  %v1533_v37 = vld [vmem:[#allocation2 + $0x18] sm:$0xff] }
  0x14   :  { %v1655_v36 = vld [vmem:[#allocation2 + $0x14] sm:$0xff]   ;;  %v1537_v38 = vld [vmem:[#allocation2 + $0x1c] sm:$0xff] }
  0x15   :  { %v1605_v39 = vld [vmem:[#allocation2 + $0x18] sm:$0xff]   ;;  %v1534_v41 = vld [vmem:[#allocation2 + $0x20] sm:$0xff]  ;;  %v1539_v43 = vld [vmem:[#allocation2 + $0x10] sm:$0xff] }
  0x16   :  { %v1656_v40 = vld [vmem:[#allocation2 + $0x1c] sm:$0xff]  ;;  %v1538_v42 = vld [vmem:[#allocation2 + $0x24] sm:$0xff] }
  0x17   :  { %v1540_v44 = vld [vmem:[#allocation2 + $0x18] sm:$0xff]  ;;  %v1541_v45 = vld [vmem:[#allocation2 + $0x20] sm:$0xff]  ;;  %v1588_v57 = vld [vmem:[#allocation3] sm:$0xff]  }
  0x1c   :  { %1301 = vmatmul.msk.bf16.gmra.mxu1 %vm106_vm2, %v1603_v31 }
  0x1e   :  { %1297 = vmatmul.msk.bf16.gmra.mxu0 %vm106_vm2, %v1653_v32 }
  0x20   :  { %1322 = vmatmul.msk.bf16.gmra.mxu2 %vm106_vm2, %v1532_v33 }
  0x21   :  { %1343 = vmatmul.msk.bf16.gmra.mxu3 %vm106_vm2, %v1536_v34 }
  0x2c   :  { %1302 = vmatmul.msk.bf16.gmra.mxu1 %vm106_vm2, %v1604_v35 }
  0x2e   :  { %1298 = vmatmul.msk.bf16.gmra.mxu0 %vm106_vm2, %v1655_v36 }
  0x30   :  { %1323 = vmatmul.msk.bf16.gmra.mxu2 %vm106_vm2, %v1533_v37 }
  0x31   :  { %1344 = vmatmul.msk.bf16.gmra.mxu3 %vm106_vm2, %v1537_v38 }
  0x3c   :  { %1303 = vmatmul.msk.bf16.gmra.mxu1 %vm106_vm2, %v1605_v39 }
  0x3e   :  { %1299 = vmatmul.msk.bf16.gmra.mxu0 %vm106_vm2, %v1656_v40 }
  0x40   :  { %1324 = vmatmul.msk.bf16.gmra.mxu2 %vm106_vm2, %v1534_v41 }
  0x41   :  { %1345 = vmatmul.msk.bf16.gmra.mxu3 %vm106_vm2, %v1538_v42 }
  0x4e   :  { %1363 = vmatmul.msk.bf16.vlgmr.msrb.gmra.mxu0 %vm106_vm2, %v1539_v43 }
  0x50   :  { %1381 = vmatmul.msk.bf16.vlgmr.msrb.gmra.mxu2 %vm529_vm4, %v1588_v57 }
  0x5e   :  { %1364 = vmatmul.msk.bf16.gmra.mxu0 %vm106_vm2, %v1540_v44 }
  0x6e   :  { %1365 = vmatmul.msk.bf16.gmra.mxu0 %vm106_vm2, %v1541_v45 }
  0x7e   :  { %1366 = vmatmul.msk.bf16.gmra.mxu0 %vm106_vm2, %v1542_v46 }
  0x89   :  { %v182_v54 = vpop.f32.mrf.mxu1 }
  0x8b   :  { %v132_v48 = vpop.f32.mrf.mxu0 }
  0x8c   :  { %v183_v1 = vadd.f32 %v182_v54, %v132_v48 }
  0x91   :  { %v184_v61 = vpop.f32.mrf.mxu1 }
  0x93   :  { %v134_v49 = vpop.f32.mrf.mxu0  ;;  %v256_v56 = vpop.f32.mrf.mxu2 }
  0x94   :  { %v338_v58 = vpop.f32.mrf.mxu3  ;;  %v276_v4 = vadd.f32 %v256_v56, %v183_v1  ;;  %v185_v10 = vadd.f32 %v184_v61, %v134_v49 }
  0x96   :  { %v358_v7 = vadd.f32 %v338_v58, %v276_v4 }
  0x99   :  { %v187_v5 = vpop.f32.mrf.mxu1 }
  0x9b   :  { %v137_v50 = vpop.f32.mrf.mxu0  ;;  %v258_v62 = vpop.f32.mrf.mxu2 }
  0x9c   :  { %v340_v63 = vpop.f32.mrf.mxu3  ;;  %v277_v13 = vadd.f32 %v258_v62, %v185_v10  ;;  %v188_v21 = vadd.f32 %v187_v5, %v137_v50 }
  0x9e   :  { %v359_v17 = vadd.f32 %v340_v63, %v277_v13 }
  0xa1   :  { %v189_v16 = vpop.f32.mrf.mxu1 }
  0xa3   :  { %v139_v51 = vpop.f32.mrf.mxu0  ;;  %v261_v6 = vpop.f32.mrf.mxu2 }
  0xa4   :  { %v343_v12 = vpop.f32.mrf.mxu3  ;;  %v278_v23 = vadd.f32 %v261_v6, %v188_v21  ;;  %v190_v32 = vadd.f32 %v189_v16, %v139_v51 }
  0xa6   :  { %v360_v27 = vadd.f32 %v343_v12, %v278_v23 }
  0xa9   :  { %v192_v29 = vpop.f32.mrf.mxu1 }
  0xab   :  { %v1841_v52 = vpop.f32.mrf.mxu0  ;;  %v263_v19 = vpop.f32.mrf.mxu2 }
  0xac   :  { %v345_v25 = vpop.f32.mrf.mxu3  ;;  %v279_v35 = vadd.f32 %v263_v19, %v190_v32  ;;  %v193_v44 = vadd.f32 %v192_v29, %v1841_v52 }
  0xae   :  { %v361_v39 = vadd.f32 %v345_v25, %v279_v35 }
  0xb1   :  { %v194_v46 = vpop.f32.mrf.mxu1 }
  0xb3   :  { %v1854_v55 = vpop.f32.mrf.mxu0  ;;  %v266_v34 = vpop.f32.mrf.mxu2 }
  0xb4   :  { %v348_v38 = vpop.f32.mrf.mxu3  ;;  %v280_v47 = vadd.f32 %v266_v34, %v193_v44  ;;  %v195_v52 = vadd.f32 %v194_v46, %v1854_v55 }
  0xb6   :  { %v362_v51 = vadd.f32 %v348_v38, %v280_v47  ;;  %v1929_v47 = vld [vmem:[%s2034_s7] sm:$0xff] }
  0xb9   :  { %v197_v63 = vpop.f32.mrf.mxu1 }
  0xbb   :  { %v1857_v59 = vpop.f32.mrf.mxu0  ;;  %v268_v49 = vpop.f32.mrf.mxu2 }
  0xbc   :  { %v350_v54 = vpop.f32.mrf.mxu3  ;;  %v281_v61 = vadd.f32 %v268_v49, %v195_v52  ;;  %v198_v55 = vadd.f32 %v197_v63, %v1857_v59 }
  0xbe   :  { %v363_v3 = vadd.f32 %v350_v54, %v281_v61 }
  0xc3   :  { %v1862_v0 = vpop.f32.mrf.mxu0  ;;  %v271_v2 = vpop.f32.mrf.mxu2 }
  0xc4   :  { %v353_v10 = vpop.f32.mrf.mxu3 }
  0xcb   :  { %v420_v9 = vpop.f32.mrf.mxu0 }
  0xcc   :  { %v440_v11 = vadd.f32 %v420_v9, %v358_v7 }
  0xce   :  { %v452_v14 = vadd.f32 %v1873_v8, %v440_v11  ;;  %v282_v11 = vadd.f32 %v271_v2, %v198_v55 }
  0xd0   :  { %v460_v15 = vmax.f32 %v452_v14, 0.0  ;;  %v199_v14 = vpop.f32.mrf.mxu1 }
  0xd1   :  { %v200_v59 = vadd.f32 %v199_v14, %v1862_v0 }
  0xd2   :  { %v473_v18 = vpack.c.bf16 %v460_v15, %v460_v15  ;;  %v364_v15 = vadd.f32 %v353_v10, %v282_v11 }
  0xd3   :  { %v422_v20 = vpop.f32.mrf.mxu0 }
  0xd4   :  { %481 = vst.msk [vmem:[#allocation3 + $0x8] sm:$0xf] %vm468_vm3, %v473_v18  ;;  %v441_v22 = vadd.f32 %v422_v20, %v359_v17  ;;  %v273_v17 = vpop.f32.mrf.mxu2 }
  0xd6   :  { %v453_v24 = vadd.f32 %v1873_v8, %v441_v22  ;;  %v283_v22 = vadd.f32 %v273_v17, %v200_v59 }
  0xd8   :  { %v461_v26 = vmax.f32 %v453_v24, 0.0  ;;  %v355_v24 = vpop.f32.mrf.mxu3 }
  0xda   :  { %v474_v28 = vpack.c.bf16 %v461_v26, %v461_v26  ;;  %v365_v26 = vadd.f32 %v355_v24, %v283_v22 }
  0xdb   :  { %v425_v30 = vpop.f32.mrf.mxu0  ;;  %v1659_v31 = vld [vmem:[#allocation3 + $0x4] sm:$0xff]  }
  0xdc   :  { %482 = vst.msk [vmem:[#allocation3 + $0xc] sm:$0xf] %vm468_vm3, %v474_v28  ;;  %v442_v33 = vadd.f32 %v425_v30, %v360_v27  ;;  %1373 = vmatmul.msk.bf16.vlgmr.msrb.gmra.mxu1 %vm529_vm4, %v1659_v31 }
  0xde   :  { %v454_v36 = vadd.f32 %v1873_v8, %v442_v33 }
  0xe0   :  { %v462_v37 = vmax.f32 %v454_v36, 0.0 }
  0xe2   :  { %v475_v40 = vpack.c.bf16 %v462_v37, %v462_v37 }
  0xe3   :  { %v427_v41 = vpop.f32.mrf.mxu0  ;;  %v1606_v42 = vld [vmem:[#allocation3 + $0x8] sm:$0xff]  }
  0xe4   :  { %v1545_v43 = vld [vmem:[#allocation3 + $0x8] sm:$0xff]  ;;  %483 = vst.msk [vmem:[#allocation3 + $0x10] sm:$0xf] %vm468_vm3, %v475_v40  ;;  %v443_v45 = vadd.f32 %v427_v41, %v361_v39  ;;  %1382 = vmatmul.msk.bf16.gmra.mxu2 %vm529_vm4, %v1606_v42  ;;  %v1560_v41 = vld [vmem:[%s2033_s6] sm:$0xff]  ;;  %v1920_v42 = vld [vmem:[%s2034_s7 + $0x8] sm:$0xff] }
  0xe5   :  { %1407 = vmatmul.msk.bf16.vlgmr.msrb.gmra.mxu3 %vm529_vm4, %v1545_v43  ;;  %v1558_v40 = vld [vmem:[#allocation3 + $0x28] sm:$0xff]  ;;  %937 = vmatpush.bf16.msra.mxu2 %v1560_v41 }
  0xe6   :  { %v455_v48 = vadd.f32 %v1873_v8, %v443_v45  ;;  %996 = vmatpush.bf16.msra.mxu3 %v1920_v42  ;;  %1080 = vmatpush.bf16.msrb.mxu0 %v1920_v42 }
  0xe7   :  { %1101 = vmatpush.bf16.msrb.mxu1 %v1920_v42 }
  0xe8   :  { %v463_v50 = vmax.f32 %v455_v48, 0.0 }
  0xe9   :  { %1122 = vmatpush.bf16.msrb.mxu2 %v1920_v42 }
  0xea   :  { %v476_v53 = vpack.c.bf16 %v463_v50, %v463_v50  ;;  %997 = vmatpush.bf16.msra.mxu3 %v1929_v47  ;;  %1081 = vmatpush.bf16.msrb.mxu0 %v1929_v47  ;;  %v604_v50 = vpop.f32.mrf.mxu2 }
  0xeb   :  { %v430_v56 = vpop.f32.mrf.mxu0  ;;  %v1661_v57 = vld [vmem:[#allocation3 + $0xc] sm:$0xff]   ;;  %1102 = vmatpush.bf16.msrb.mxu1 %v1929_v47 }
  0xec   :  { %v1550_v58 = vld [vmem:[#allocation3 + $0xc] sm:$0xff]  ;;  %484 = vst.msk [vmem:[#allocation3 + $0x14] sm:$0xf] %vm468_vm3, %v476_v53  ;;  %v444_v60 = vadd.f32 %v430_v56, %v362_v51  ;;  %1374 = vmatmul.msk.bf16.gmra.mxu1 %vm529_vm4, %v1661_v57 }
  0xed   :  { %1433 = vmatmul.msk.bf16.vlgmr.msra.gmra.mxu0 %vm529_vm4, %v1550_v58  ;;  %1123 = vmatpush.bf16.msrb.mxu2 %v1929_v47  ;;  %v968_v57 = vld [vmem:[%s2036_s1] sm:$0xff] }
  0xee   :  { %v456_v62 = vadd.f32 %v1873_v8, %v444_v60  ;;  %1017 = vmatpush.bf16.msrb.mxu3 %v1920_v42  ;;  %v970_v52 = vpack.c.bf16 %v968_v57, %v968_v57 }
  0xf0   :  { %v464_v1 = vmax.f32 %v456_v62, 0.0 }
  0xf2   :  { %v477_v4 = vpack.c.bf16 %v464_v1, %v464_v1  ;;  %1018 = vmatpush.bf16.msrb.mxu3 %v1929_v47  ;;  %v606_v56 = vpop.f32.mrf.mxu2 }
  0xf3   :  { %v432_v5 = vpop.f32.mrf.mxu0  ;;  %v1607_v6 = vld [vmem:[#allocation3 + $0x10] sm:$0xff]  }
  0xf4   :  { %v1546_v7 = vld [vmem:[#allocation3 + $0x10] sm:$0xff]  ;;  %485 = vst.msk [vmem:[#allocation3 + $0x18] sm:$0xf] %vm468_vm3, %v477_v4  ;;  %v445_v9 = vadd.f32 %v432_v5, %v363_v3  ;;  %1383 = vmatmul.msk.bf16.gmra.mxu2 %vm529_vm4, %v1607_v6 }
  0xf5   :  { %1408 = vmatmul.msk.bf16.gmra.mxu3 %vm529_vm4, %v1546_v7  ;;  %v1555_v38 = vld [vmem:[#allocation3 + $0x10] sm:$0xff] }
  0xf6   :  { %v457_v12 = vadd.f32 %v1873_v8, %v445_v9  ;;  %v1952_v9 = vld [vmem:[%s2032_s5] ss:$0 sm:$0xff] }
  0xf8   :  { %v465_v13 = vmax.f32 %v457_v12, 0.0 }
  0xfa   :  { %v478_v16 = vpack.c.bf16 %v465_v13, %v465_v13 }
  0xfb   :  { %v435_v18 = vpop.f32.mrf.mxu0  ;;  %v1663_v19 = vld [vmem:[#allocation3 + $0x14] sm:$0xff]  }
  0xfc   :  { %v1551_v20 = vld [vmem:[#allocation3 + $0x14] sm:$0xff]  ;;  %486 = vst.msk [vmem:[#allocation3 + $0x1c] sm:$0xf] %vm468_vm3, %v478_v16  ;;  %v446_v21 = vadd.f32 %v435_v18, %v364_v15  ;;  %1375 = vmatmul.msk.bf16.gmra.mxu1 %vm529_vm4, %v1663_v19 }
  0xfd   :  { %1434 = vmatmul.msk.bf16.gmra.mxu0 %vm529_vm4, %v1551_v20 }
  0xfe   :  { %v458_v23 = vadd.f32 %v1873_v8, %v446_v21 }
 0x100   :  { %v466_v25 = vmax.f32 %v458_v23, 0.0 }
 0x102   :  { %v479_v27 = vpack.c.bf16 %v466_v25, %v466_v25 }
 0x103   :  { %v437_v28 = vpop.f32.mrf.mxu0  ;;  %v1608_v29 = vld [vmem:[#allocation3 + $0x18] sm:$0xff]  }
 0x104   :  { %v1547_v30 = vld [vmem:[#allocation3 + $0x18] sm:$0xff]  ;;  %487 = vst.msk [vmem:[#allocation3 + $0x20] sm:$0xf] %vm468_vm3, %v479_v27  ;;  %v447_v0 = vadd.f32 %v437_v28, %v365_v26  ;;  %1384 = vmatmul.msk.bf16.gmra.mxu2 %vm529_vm4, %v1608_v29 }
 0x105   :  { %1409 = vmatmul.msk.bf16.gmra.mxu3 %vm529_vm4, %v1547_v30 }
 0x106   :  { %v459_v31 = vadd.f32 %v1873_v8, %v447_v0  ;;  %v1556_v8 = vld [vmem:[#allocation3 + $0x18] sm:$0xff] }
 0x108   :  { %v467_v32 = vmax.f32 %v459_v31, 0.0 }
 0x10a   :  { %v480_v33 = vpack.c.bf16 %v467_v32, %v467_v32 }
 0x10b   :  { %v1664_v34 = vld [vmem:[#allocation3 + $0x1c] sm:$0xff] }
 0x10c   :  { %v1552_v35 = vld [vmem:[#allocation3 + $0x1c] sm:$0xff]  ;;  %488 = vst.msk [vmem:[#allocation3 + $0x24] sm:$0xf] %vm468_vm3, %v480_v33  ;;  %1376 = vmatmul.msk.bf16.gmra.mxu1 %vm529_vm4, %v1664_v34 }
 0x10d   :  { %1435 = vmatmul.msk.bf16.gmra.mxu0 %vm529_vm4, %v1552_v35 }
 0x113   :  { %v1548_v36 = vld [vmem:[#allocation3 + $0x20] sm:$0xff] }
 0x114   :  { %v1553_v37 = vld [vmem:[#allocation3 + $0x24] sm:$0xff] }
 0x115   :  { %1410 = vmatmul.msk.bf16.gmra.mxu3 %vm529_vm4, %v1548_v36  ;;  %v1557_v39 = vld [vmem:[#allocation3 + $0x20] sm:$0xff] }
 0x11c   :  { %1459 = vmatmul.msk.bf16.vlgmr.msra.gmra.mxu1 %vm529_vm4, %v1555_v38 }
 0x11d   :  { %1436 = vmatmul.msk.bf16.gmra.mxu0 %vm529_vm4, %v1553_v37 }
 0x125   :  { %1479 = vmatmul.msk.bf16.vlgmr.msra.gmra.mxu3 %vm959_vm5, %v970_v52 }
 0x126   :  { %1038 = vmatpush.bf16.msra.mxu3 %v1920_v42 }
 0x12a   :  { %1039 = vmatpush.bf16.msra.mxu3 %v1929_v47 }
 0x12c   :  { %1460 = vmatmul.msk.bf16.gmra.mxu1 %vm529_vm4, %v1556_v8 }
 0x13c   :  { %1461 = vmatmul.msk.bf16.gmra.mxu1 %vm529_vm4, %v1557_v39 }
 0x14c   :  { %1462 = vmatmul.msk.bf16.gmra.mxu1 %vm529_vm4, %v1558_v40 }
 0x159   :  { %v551_v43 = vpop.f32.mrf.mxu1 }
 0x15a   :  { %v605_v62 = vadd.f32 %v604_v50, %v551_v43 }
 0x161   :  { %v553_v44 = vpop.f32.mrf.mxu1 }
 0x162   :  { %v607_v4 = vadd.f32 %v606_v56, %v553_v44 }
 0x167   :  { %v609_v63 = vpop.f32.mrf.mxu2 }
 0x168   :  { %v682_v51 = vpop.f32.mrf.mxu3 }
 0x169   :  { %v556_v45 = vpop.f32.mrf.mxu1  ;;  %v702_v2 = vadd.f32 %v682_v51, %v605_v62 }
 0x16a   :  { %v768_v53 = vpop.f32.mrf.mxu0  ;;  %v610_v18 = vadd.f32 %v609_v63, %v556_v45 }
 0x16b   :  { %v788_v6 = vadd.f32 %v768_v53, %v702_v2 }
 0x16f   :  { %v611_v10 = vpop.f32.mrf.mxu2 }
 0x170   :  { %v684_v58 = vpop.f32.mrf.mxu3 }
 0x171   :  { %v558_v46 = vpop.f32.mrf.mxu1  ;;  %v703_v7 = vadd.f32 %v684_v58, %v607_v4 }
 0x172   :  { %v770_v60 = vpop.f32.mrf.mxu0  ;;  %v612_v23 = vadd.f32 %v611_v10, %v558_v46 }
 0x173   :  { %v789_v11 = vadd.f32 %v770_v60, %v703_v7 }
 0x177   :  { %v614_v24 = vpop.f32.mrf.mxu2 }
 0x178   :  { %v687_v1 = vpop.f32.mrf.mxu3 }
 0x179   :  { %v561_v48 = vpop.f32.mrf.mxu1  ;;  %v704_v59 = vadd.f32 %v687_v1, %v610_v18 }
 0x17a   :  { %v773_v5 = vpop.f32.mrf.mxu0  ;;  %v615_v36 = vadd.f32 %v614_v24, %v561_v48 }
 0x17b   :  { %v790_v26 = vadd.f32 %v773_v5, %v704_v59 }
 0x17f   :  { %v616_v33 = vpop.f32.mrf.mxu2 }
 0x180   :  { %v689_v12 = vpop.f32.mrf.mxu3 }
 0x181   :  { %v1937_v49 = vpop.f32.mrf.mxu1  ;;  %v705_v27 = vadd.f32 %v689_v12, %v612_v23 }
 0x182   :  { %v775_v17 = vpop.f32.mrf.mxu0  ;;  %v617_v43 = vadd.f32 %v616_v33, %v1937_v49 }
 0x183   :  { %v791_v30 = vadd.f32 %v775_v17, %v705_v27 }
 0x187   :  { %v619_v46 = vpop.f32.mrf.mxu2 }
 0x188   :  { %v692_v25 = vpop.f32.mrf.mxu3 }
 0x189   :  { %v1939_v54 = vpop.f32.mrf.mxu1  ;;  %v706_v8 = vadd.f32 %v692_v25, %v615_v36 }
 0x18a   :  { %v778_v29 = vpop.f32.mrf.mxu0  ;;  %v620_v60 = vadd.f32 %v619_v46, %v1939_v54 }
 0x18b   :  { %v792_v44 = vadd.f32 %v778_v29, %v706_v8 }
 0x18f   :  { %v621_v49 = vpop.f32.mrf.mxu2 }
 0x190   :  { %v694_v35 = vpop.f32.mrf.mxu3 }
 0x191   :  { %v1946_v61 = vpop.f32.mrf.mxu1  ;;  %v707_v45 = vadd.f32 %v694_v35, %v617_v43 }
 0x192   :  { %v780_v40 = vpop.f32.mrf.mxu0  ;;  %v622_v5 = vadd.f32 %v621_v49, %v1946_v61 }
 0x193   :  { %v793_v53 = vadd.f32 %v780_v40, %v707_v45 }
 0x198   :  { %v697_v51 = vpop.f32.mrf.mxu3 }
 0x199   :  { %v854_v3 = vpop.f32.mrf.mxu1  ;;  %v708_v1 = vadd.f32 %v697_v51, %v620_v60 }
 0x19a   :  { %v874_v55 = vadd.f32 %v854_v3, %v788_v6  ;;  %v783_v58 = vpop.f32.mrf.mxu0 }
 0x19b   :  { %v794_v6 = vadd.f32 %v783_v58, %v708_v1  ;;  %v1564_v1 = vld [vmem:[%s2037_s9 + $0x8] sm:$0xff] }
 0x19c   :  { %v886_v14 = vadd.f32 %v1952_v9, %v874_v55  ;;  %1204 = vmatpush.bf16.msra.mxu1 %v1564_v1 }
 0x19e   :  { %v894_v19 = vmax.f32 %v886_v14, 0.0 }
 0x1a0   :  { %v699_v3 = vpop.f32.mrf.mxu3 }
 0x1a1   :  { %v856_v13 = vpop.f32.mrf.mxu1  ;;  %v709_v7 = vadd.f32 %v699_v3, %v622_v5 }
 0x1a2   :  { %v875_v15 = vadd.f32 %v856_v13, %v789_v11  ;;  %v785_v55 = vpop.f32.mrf.mxu0 }
 0x1a3   :  { %v795_v11 = vadd.f32 %v785_v55, %v709_v7 }
 0x1a4   :  { %v887_v16 = vadd.f32 %v1952_v9, %v875_v15 }
 0x1a6   :  { %v895_v20 = vmax.f32 %v887_v16, 0.0 }
 0x1a8   :  { %v902_v21 = vpack.c.bf16 %v895_v20, %v894_v19  ;;  %v999_v18 = vpop.f32.mrf.mxu3  ;;  %v1668_v19 = vld [vmem:[%s2035_s8] ss:$0 sm:$0xff] }
 0x1a9   :  { %v859_v22 = vpop.f32.mrf.mxu1 }
 0x1aa   :  { %1467 = vmatmul.msk.bf16.vlgmr.msra.gmra.mxu2 %vm529_vm4, %v902_v21  ;;  %v876_v28 = vadd.f32 %v859_v22, %v790_v26 }
 0x1ac   :  { %v888_v31 = vadd.f32 %v1952_v9, %v876_v28 }
 0x1ae   :  { %v896_v37 = vmax.f32 %v888_v31, 0.0 }
 0x1b0   :  { %v1001_v61 = vpop.f32.mrf.mxu3 }
 0x1b1   :  { %v861_v0 = vpop.f32.mrf.mxu1  ;;  %v1568_v61 = vld [vmem:[%s2037_s9 + $0x28] sm:$0xff] }
 0x1b2   :  { %v877_v32 = vadd.f32 %v861_v0, %v791_v30  ;;  %1238 = vmatpush.bf16.msra.mxu2 %v1568_v61 }
 0x1b4   :  { %v889_v34 = vadd.f32 %v1952_v9, %v877_v32 }
 0x1b6   :  { %v897_v38 = vmax.f32 %v889_v34, 0.0 }
 0x1b8   :  { %v903_v39 = vpack.c.bf16 %v897_v38, %v896_v37 }
 0x1b9   :  { %v864_v41 = vpop.f32.mrf.mxu1 }
 0x1ba   :  { %1468 = vmatmul.msk.bf16.gmra.mxu2 %vm529_vm4, %v903_v39  ;;  %v878_v50 = vadd.f32 %v864_v41, %v792_v44 }
 0x1bc   :  { %v890_v57 = vadd.f32 %v1952_v9, %v878_v50 }
 0x1be   :  { %v898_v62 = vmax.f32 %v890_v57, 0.0 }
 0x1c1   :  { %v866_v56 = vpop.f32.mrf.mxu1 }
 0x1c2   :  { %v879_v48 = vadd.f32 %v866_v56, %v793_v53 }
 0x1c4   :  { %v891_v52 = vadd.f32 %v1952_v9, %v879_v48 }
 0x1c6   :  { %v899_v63 = vmax.f32 %v891_v52, 0.0 }
 0x1c8   :  { %v904_v2 = vpack.c.bf16 %v899_v63, %v898_v62 }
 0x1c9   :  { %v869_v4 = vpop.f32.mrf.mxu1 }
 0x1ca   :  { %1469 = vmatmul.msk.bf16.gmra.mxu2 %vm529_vm4, %v904_v2  ;;  %v880_v10 = vadd.f32 %v869_v4, %v794_v6  ;;  %v1563_v2 = vld [vmem:[%s2037_s9] sm:$0xff] }
 0x1cb   :  { %1205 = vmatpush.bf16.msra.mxu1 %v1563_v2 }
 0x1cc   :  { %v892_v13 = vadd.f32 %v1952_v9, %v880_v10  ;;  %v1566_v10 = vld [vmem:[%s2037_s9 + $0x18] sm:$0xff] }
 0x1cd   :  { %1179 = vmatpush.bf16.msra.mxu0 %v1566_v10 }
 0x1ce   :  { %v900_v15 = vmax.f32 %v892_v13, 0.0 }
 0x1d1   :  { %v871_v12 = vpop.f32.mrf.mxu1 }
 0x1d2   :  { %v881_v54 = vadd.f32 %v871_v12, %v795_v11  ;;  %v1565_v11 = vld [vmem:[%s2037_s9 + $0x10] sm:$0xff] }
 0x1d3   :  { %1180 = vmatpush.bf16.msra.mxu0 %v1565_v11 }
 0x1d4   :  { %v893_v14 = vadd.f32 %v1952_v9, %v881_v54 }
 0x1d6   :  { %v901_v16 = vmax.f32 %v893_v14, 0.0 }
 0x1d8   :  { %v905_v17 = vpack.c.bf16 %v901_v16, %v900_v15 }
 0x1da   :  { %1470 = vmatmul.msk.bf16.gmra.mxu2 %vm529_vm4, %v905_v17 }
 0x22d   :  { %v939_v20 = vpop.f32.mrf.mxu2 }
 0x22e   :  { %v940_v59 = vadd.f32 %v1668_v19, %v939_v20  ;;  %v1570_v20 = vld [vmem:[%s2039_s11 + $0x8] sm:$0xff] }
 0x230   :  { %960 = vst.msk [vmem:[#allocation4] sm:$0xff] %vm959_vm5, %v940_v59 }
 0x235   :  { %v941_v21 = vpop.f32.mrf.mxu2 }
 0x236   :  { %v942_v22 = vadd.f32 %v1668_v19, %v941_v21 }
 0x237   :  { %v969_v23 = vld [vmem:[#allocation4] sm:$0xff] }
 0x238   :  { %v1003_v24 = vadd.f32 %v999_v18, %v969_v23  ;;  %961 = vst.msk [vmem:[#allocation4 + $0x8] sm:$0xff] %vm959_vm5, %v942_v22 }
 0x23a   :  { %1671 = vtanh.f32 %v1003_v24 }
 0x23d   :  { %v944_v9 = vpop.f32.mrf.mxu2 }
 0x23e   :  { %v945_v25 = vadd.f32 %v1668_v19, %v944_v9 }
 0x23f   :  { %v1006_v37 = vld [vmem:[#allocation4 + $0x8] sm:$0xff] }
 0x240   :  { %v1672_v26 = vpop.eup %1671  ;;  %962 = vst.msk [vmem:[#allocation4 + $0x10] sm:$0xff] %vm959_vm5, %v945_v25 }
 0x241   :  { %v1007_v27 = vpack.c.bf16 %v1672_v26, %v1672_v26 }
 0x243   :  { %1480 = vmatmul.msk.bf16.vlgmr.msrb.gmra.mxu3 %vm959_vm5, %v1007_v27  ;;  %v1569_v27 = vld [vmem:[%s2039_s11] sm:$0xff] }
 0x244   :  { %1059 = vmatpush.bf16.msrb.mxu3 %v1920_v42 }
 0x245   :  { %v946_v28 = vpop.f32.mrf.mxu2 }
 0x246   :  { %v947_v29 = vadd.f32 %v1668_v19, %v946_v28 }
 0x247   :  { %v1027_v43 = vld [vmem:[#allocation4 + $0x10] sm:$0xff] }
 0x248   :  { %963 = vst.msk [vmem:[#allocation4 + $0x18] sm:$0xff] %vm959_vm5, %v947_v29  ;;  %1060 = vmatpush.bf16.msrb.mxu3 %v1929_v47  ;;  %v1669_v29 = vld [vmem:[%s2038_s10] ss:$0 sm:$0xff] }
 0x24d   :  { %v949_v30 = vpop.f32.mrf.mxu2 }
 0x24e   :  { %v950_v0 = vadd.f32 %v1668_v19, %v949_v30 }
 0x24f   :  { %v1048_v53 = vld [vmem:[#allocation4 + $0x18] sm:$0xff] }
 0x250   :  { %964 = vst.msk [vmem:[#allocation4 + $0x20] sm:$0xff] %vm959_vm5, %v950_v0 }
 0x255   :  { %v951_v31 = vpop.f32.mrf.mxu2 }
 0x256   :  { %v952_v32 = vadd.f32 %v1668_v19, %v951_v31 }
 0x258   :  { %965 = vst.msk [vmem:[#allocation4 + $0x28] sm:$0xff] %vm959_vm5, %v952_v32 }
 0x25d   :  { %v954_v33 = vpop.f32.mrf.mxu2 }
 0x25e   :  { %v955_v34 = vadd.f32 %v1668_v19, %v954_v33 }
 0x25f   :  { %v1090_v3 = vld [vmem:[#allocation4 + $0x28] sm:$0xff] }
 0x260   :  { %966 = vst.msk [vmem:[#allocation4 + $0x30] sm:$0xff] %vm959_vm5, %v955_v34 }
 0x265   :  { %v956_v35 = vpop.f32.mrf.mxu2 }
 0x266   :  { %v957_v36 = vadd.f32 %v1668_v19, %v956_v35  ;;  %v1567_v19 = vld [vmem:[%s2037_s9 + $0x20] sm:$0xff] }
 0x267   :  { %v1111_v13 = vld [vmem:[#allocation4 + $0x30] sm:$0xff]  ;;  %1239 = vmatpush.bf16.msra.mxu2 %v1567_v19  ;;  %v1670_v35 = vld [vmem:[%s2040_s12] ss:$0 sm:$0xff] }
 0x268   :  { %967 = vst.msk [vmem:[#allocation4 + $0x38] sm:$0xff] %vm959_vm5, %v957_v36 }
 0x26f   :  { %v1132_v21 = vld [vmem:[#allocation4 + $0x38] sm:$0xff] }
 0x2c6   :  { %v1020_v38 = vpop.f32.mrf.mxu3 }
 0x2c7   :  { %v1024_v8 = vadd.f32 %v1020_v38, %v1006_v37 }
 0x2c9   :  { %1673 = vtanh.f32 %v1024_v8 }
 0x2ce   :  { %v1022_v39 = vpop.f32.mrf.mxu3 }
 0x2cf   :  { %v1674_v40 = vpop.eup %1673 }
 0x2d0   :  { %v1028_v41 = vpack.c.bf16 %v1674_v40, %v1674_v40 }
 0x2d2   :  { %1481 = vmatmul.msk.bf16.vlgmr.msra.gmra.mxu3 %vm959_vm5, %v1028_v41 }
 0x2d3   :  { %1143 = vmatpush.bf16.msra.mxu3 %v1920_v42  ;;  %v1069_v42 = vld [vmem:[#allocation4 + $0x20] sm:$0xff] }
 0x2d7   :  { %1144 = vmatpush.bf16.msra.mxu3 %v1929_v47 }
 0x355   :  { %v1041_v44 = vpop.f32.mrf.mxu3 }
 0x356   :  { %v1045_v45 = vadd.f32 %v1041_v44, %v1027_v43 }
 0x358   :  { %1675 = vtanh.f32 %v1045_v45 }
 0x35d   :  { %v1043_v46 = vpop.f32.mrf.mxu3 }
 0x35e   :  { %v1676_v50 = vpop.eup %1675 }
 0x35f   :  { %v1049_v51 = vpack.c.bf16 %v1676_v50, %v1676_v50 }
 0x361   :  { %1482 = vmatmul.msk.bf16.vlgmr.msrb.gmra.mxu3 %vm959_vm5, %v1049_v51 }
 0x362   :  { %1282 = vmatpush.bf16.msrb.mxu3 %v1570_v20 }
 0x366   :  { %1283 = vmatpush.bf16.msrb.mxu3 %v1569_v27 }
 0x3e4   :  { %v1062_v56 = vpop.f32.mrf.mxu3 }
 0x3e5   :  { %v1066_v57 = vadd.f32 %v1062_v56, %v1048_v53 }
 0x3e7   :  { %1677 = vtanh.f32 %v1066_v57 }
 0x3ec   :  { %v1064_v48 = vpop.f32.mrf.mxu3 }
 0x3ed   :  { %v1678_v58 = vpop.eup %1677 }
 0x3ee   :  { %v1070_v52 = vpack.c.bf16 %v1678_v58, %v1678_v58 }
 0x3f0   :  { %1483 = vmatmul.msk.bf16.vlgmr.msrb.gmra.mxu0 %vm959_vm5, %v1070_v52 }
 0x46d   :  { %v1083_v47 = vpop.f32.mrf.mxu0 }
 0x46e   :  { %v1087_v60 = vadd.f32 %v1083_v47, %v1069_v42 }
 0x470   :  { %1679 = vtanh.f32 %v1087_v60 }
 0x475   :  { %v1085_v62 = vpop.f32.mrf.mxu0 }
 0x476   :  { %v1680_v63 = vpop.eup %1679 }
 0x477   :  { %v1091_v49 = vpack.c.bf16 %v1680_v63, %v1680_v63 }
 0x479   :  { %1484 = vmatmul.msk.bf16.vlgmr.msrb.gmra.mxu1 %vm959_vm5, %v1091_v49 }
 0x4f6   :  { %v1104_v4 = vpop.f32.mrf.mxu1 }
 0x4f7   :  { %v1108_v5 = vadd.f32 %v1104_v4, %v1090_v3 }
 0x4f9   :  { %1681 = vtanh.f32 %v1108_v5 }
 0x4fe   :  { %v1106_v6 = vpop.f32.mrf.mxu1 }
 0x4ff   :  { %v1682_v7 = vpop.eup %1681 }
 0x500   :  { %v1112_v55 = vpack.c.bf16 %v1682_v7, %v1682_v7 }
 0x502   :  { %1485 = vmatmul.msk.bf16.vlgmr.msrb.gmra.mxu2 %vm959_vm5, %v1112_v55  ;;  %1508 = vmatmul.msk.bf16.vlgmr.msra.gmra.mxu1 %vm959_vm5, %v1112_v55 }
 0x57f   :  { %v1207_v12 = vpop.f32.mrf.mxu1 }
 0x585   :  { %v1125_v54 = vpop.f32.mrf.mxu2 }
 0x586   :  { %v1129_v14 = vadd.f32 %v1125_v54, %v1111_v13 }
 0x587   :  { %v1209_v15 = vpop.f32.mrf.mxu1 }
 0x588   :  { %1683 = vtanh.f32 %v1129_v14 }
 0x58d   :  { %v1127_v16 = vpop.f32.mrf.mxu2 }
 0x58e   :  { %v1684_v17 = vpop.eup %1683 }
 0x58f   :  { %v1133_v18 = vpack.c.bf16 %v1684_v17, %v1684_v17 }
 0x591   :  { %1486 = vmatmul.msk.bf16.vlgmr.msra.gmra.mxu3 %vm959_vm5, %v1133_v18  ;;  %1499 = vmatmul.msk.bf16.vlgmr.msra.gmra.mxu0 %vm959_vm5, %v1133_v18 }
 0x60e   :  { %v1182_v59 = vpop.f32.mrf.mxu0 }
 0x60f   :  { %v1208_v28 = vadd.f32 %v1207_v12, %v1182_v59 }
 0x614   :  { %v1146_v22 = vpop.f32.mrf.mxu3 }
 0x615   :  { %v1150_v23 = vadd.f32 %v1146_v22, %v1132_v21 }
 0x616   :  { %v1184_v24 = vpop.f32.mrf.mxu0 }
 0x617   :  { %1685 = vtanh.f32 %v1150_v23 }
 0x61c   :  { %v1148_v9 = vpop.f32.mrf.mxu3 }
 0x61d   :  { %v1686_v25 = vpop.eup %1685 }
 0x61e   :  { %v1211_v26 = vpack.c.bf16 %v1686_v25, %v1686_v25 }
 0x620   :  { %1521 = vmatmul.msk.bf16.vlgmr.msra.gmra.mxu2 %vm959_vm5, %v1211_v26 }
 0x6a3   :  { %v1241_v30 = vpop.f32.mrf.mxu2 }
 0x6a4   :  { %v1245_v0 = vadd.f32 %v1241_v30, %v1208_v28 }
 0x6a6   :  { %v1250_v31 = vadd.f32 %v1669_v29, %v1245_v0 }
 0x6a8   :  { %v1251_v32 = vmax.f32 %v1250_v31, 0.0 }
 0x6aa   :  { %v1252_v33 = vpack.c.bf16 %v1251_v32, %v1251_v32 }
 0x6ab   :  { %v1243_v34 = vpop.f32.mrf.mxu2 }
 0x6ac   :  { %1530 = vmatmul.msk.bf16.vlgmr.msrb.gmra.mxu3 %vm959_vm5, %v1252_v33 }
 0x72f   :  { %v1285_v36 = vpop.f32.mrf.mxu3 }
 0x730   :  { %v1286_v37 = vadd.f32 %v1670_v35, %v1285_v36 }
 0x732   :  { %1290 = vst.msk [vmem:[%s2041_s13] sm:$0xff] %vm1289_vm6, %v1286_v37 }
 0x737   :  { %v1287_v38 = vpop.f32.mrf.mxu3 }

</bundles_post_ra>
